<compile_context>
chip_gen: v7x
topology: tpu7x:2x2x1
jax: 0.10.0
libtpu: 0.0.40
codegen_flags: <defaults>
</compile_context>

<pallas_src>
import functools
import math

import jax
import jax.numpy as jnp
import numpy as np
from jax import lax
from jax.experimental import pallas as pl
from jax.experimental.pallas import tpu as pltpu


def _round_up(x, m):
    return (x + m - 1) // m * m


# --------------------------------------------------------------------------
# Pallas kernel: one (batch, row-tile) per grid step.
# --------------------------------------------------------------------------
def _inverted_residual_kernel(*refs, stride, use_res, mm_dtype):
    if stride == 1:
        (xc_ref, xt_ref, xb_ref, w1_ref, b1_ref, wdw_ref, bdw_ref,
         w3_ref, b3_ref, o_ref, hp_ref) = refs
    else:  # stride == 2: no bottom-halo input (its rows are never read)
        (xc_ref, xt_ref, w1_ref, b1_ref, wdw_ref, bdw_ref,
         w3_ref, b3_ref, o_ref, hp_ref) = refs

    _, TH, W, _ = xc_ref.shape             # row tile of the input
    _, THo, Wo, Cout = o_ref.shape         # row tile of the output
    Cmid = w1_ref.shape[1]
    HPH = hp_ref.shape[0]                  # TH + 2 (stride 1) / TH + 1 (stride 2)

    t = pl.program_id(1)
    t_last = pl.num_programs(1) - 1

    # ---- 1x1 expand conv + folded BN + ReLU6 -------------------------------
    # Halo rows and centre rows fused into ONE MXU matmul and ONE aligned
    # store into the hp scratch (hp row r <-> input row t*TH - 1 + r).
    parts = [xt_ref[0], xc_ref[0]]
    if stride == 1:
        parts.append(xb_ref[0])
    xin = jnp.concatenate(parts, axis=0)                       # (HPH, W, Cin)
    h = jnp.dot(xin.reshape(HPH * W, xin.shape[-1]).astype(mm_dtype),
                w1_ref[...], preferred_element_type=jnp.float32)
    h = jnp.clip(h + b1_ref[...], 0.0, 6.0)
    hp_ref[...] = h.reshape(HPH, W, Cmid)

    # Depthwise zero padding is applied to the *expanded* activation, so the
    # image-border halo rows must be exactly zero (overwrite after the store).
    zrow = jnp.zeros((1, W, Cmid), jnp.float32)

    @pl.when(t == 0)
    def _():
        hp_ref[pl.ds(0, 1), :, :] = zrow

    if stride == 1:
        @pl.when(t == t_last)
        def _():
            hp_ref[pl.ds(TH + 1, 1), :, :] = zrow

    # ---- 3x3 depthwise conv + folded BN + ReLU6 ----------------------------
    # All 9 taps accumulate into a register value; a single pass writes it.
    def tap(i):
        return wdw_ref[pl.ds(i, 1), :].reshape(1, 1, Cmid)

    col = lax.broadcasted_iota(jnp.int32, (THo, Wo, Cmid), 1)
    at_left = col == 0
    at_right = col == (Wo - 1)             # only used for stride == 1 (Wo == W)

    acc = jnp.zeros((THo, Wo, Cmid), jnp.float32)
    for dh in range(3):                    # fully unrolled 9-tap schedule
        if stride == 1:
            mid = hp_ref[pl.ds(dh, THo), :, :]                  # aligned load
            # x[w-1] / x[w+1] windows via XLU rolls + border zero select
            left = jnp.where(at_left, 0.0, pltpu.roll(mid, 1, axis=1))
            right = jnp.where(at_right, 0.0, pltpu.roll(mid, Wo - 1, axis=1))
        else:
            # stride 2: read only the output positions with strided pl.ds
            mid = hp_ref[pl.ds(dh, THo, stride=2),
                         pl.ds(0, Wo, stride=2), :]             # cols 2*wo
            right = hp_ref[pl.ds(dh, THo, stride=2),
                           pl.ds(1, Wo, stride=2), :]           # cols 2*wo+1
            # cols 2*wo-1 == right shifted by one output column (zero at wo=0)
            left = jnp.where(at_left, 0.0, pltpu.roll(right, 1, axis=1))
        acc = (acc
               + left * tap(3 * dh + 0)
               + mid * tap(3 * dh + 1)
               + right * tap(3 * dh + 2))

    a = jnp.clip(acc + bdw_ref[...].reshape(1, 1, Cmid), 0.0, 6.0)

    # ---- 1x1 project conv + folded BN (+ residual) -------------------------
    y = jnp.dot(a.reshape(THo * Wo, Cmid).astype(mm_dtype), w3_ref[...],
                preferred_element_type=jnp.float32)
    y = (y + b3_ref[...]).reshape(THo, Wo, Cout)
    if use_res:
        y = y + xc_ref[0]                  # stride==1 -> THo==TH, Wo==W, Cin==Cout
    o_ref[0] = y.astype(o_ref.dtype)


# --------------------------------------------------------------------------
# Working-set estimate (VMEM is lane/sublane padded) and tile_h selection.
# --------------------------------------------------------------------------
def _step_vmem_bytes(th, W, Cin, Cmid, Cout, stride, mm_itemsize):
    lane, sub = 128, 8
    rl = lambda c: _round_up(max(int(c), 1), lane)
    rs = lambda s: _round_up(max(int(s), 1), sub)
    THo = th // stride
    Wo = (W - 1) // stride + 1
    hp_h = th + (2 if stride == 1 else 1)
    b = 0
    b += 2 * th * rs(W) * rl(Cin) * 4                       # centre input (x2 buf)
    b += 2 * 2 * rs(W) * rl(Cin) * 4                        # halo row blocks
    b += 2 * THo * rs(Wo) * rl(Cout) * 4                    # output block (x2 buf)
    b += hp_h * rs(W) * rl(Cmid) * 4                        # hp scratch
    b += 2 * (rs(Cin) + rs(Cmid)) * rl(max(Cmid, Cout)) * mm_itemsize  # 1x1 weights
    b += (rs(9) + 4 * rs(1)) * rl(max(Cmid, Cout)) * 4      # dw weights + biases
    b += 3 * hp_h * rs(W) * rl(Cmid) * 4                    # expand result / spill
    b += 3 * THo * rs(Wo) * rl(Cmid) * 4                    # depthwise temporaries
    return b


def _pick_tile_h(H, W, Cin, Cmid, Cout, stride, N, mm_itemsize, budget):
    cands = [t for t in range(stride, H + 1, stride) if H % t == 0]
    if not cands:
        return H
    fit = [t for t in cands
           if _step_vmem_bytes(t, W, Cin, Cmid, Cout, stride, mm_itemsize) <= budget]
    if not fit:
        fit = [cands[0]]
    # keep at least 2 parallel grid steps when possible (feeds v7x's 2 TCs)
    pref = [t for t in fit if N * (H // t) >= 2]
    return max(pref) if pref else max(fit)


# --------------------------------------------------------------------------
# Wrapper: row tiling, BlockSpecs (true channel counts), VMEM budget.
# --------------------------------------------------------------------------
def inverted_residual_pallas(x_nhwc, params, *, stride, use_res, tile_h=None,
                             mm_dtype=jnp.bfloat16, out_dtype=jnp.float32,
                             vmem_budget_bytes=24 << 20):
    """x_nhwc: [N, H, W, Cin] f32.  params: BN-folded weights.
    Returns [N, Ho, Wo, Cout] in out_dtype (f32 by default; bf16 halves
    output HBM writeback if the consumer accepts it)."""
    N, H, W, Cin = x_nhwc.shape
    w1, b1, wdw, bdw, w3, b3 = params
    Cmid, Cout = w1.shape[1], w3.shape[1]
    assert stride in (1, 2)
    if use_res:
        assert stride == 1 and Cin == Cout
    if stride == 2:
        # TODO(synk): odd H or W with stride=2 needs an extra zero row/column.
        assert H % 2 == 0 and W % 2 == 0, (H, W)

    itm = jnp.dtype(mm_dtype).itemsize
    if tile_h is None:
        tile_h = _pick_tile_h(H, W, Cin, Cmid, Cout, stride, N, itm,
                              vmem_budget_bytes)
    # TODO(synk): H % tile_h != 0 needs spatial padding in the wrapper.
    assert H % tile_h == 0 and tile_h % stride == 0, (H, tile_h, stride)
    th = tile_h
    n_tiles = H // th
    THo = th // stride
    Wo = (W - 1) // stride + 1
    Ho = n_tiles * THo
    hp_h = th + (2 if stride == 1 else 1)

    # bf16 inputs to both 1x1 MXU matmuls (f32 accumulation).
    w1k = w1.astype(mm_dtype)
    w3k = w3.astype(mm_dtype)
    wdwk = wdw.reshape(9, Cmid)

    est = _step_vmem_bytes(th, W, Cin, Cmid, Cout, stride, itm)
    vmem_limit = int(min(max(2 * est, 32 << 20), 64 << 20))  # safe on v7x (64 MiB/TC)

    kernel = functools.partial(_inverted_residual_kernel, stride=stride,
                               use_res=use_res, mm_dtype=mm_dtype)

    # Input blocks carry the true channel count (last dims equal full array
    # dims, so the (8,128) divisibility rule does not apply) -> no HBM
    # inflation from channel padding.
    x_specs = [
        # row tile of the input
        pl.BlockSpec((1, th, W, Cin), lambda n, t: (n, t, 0, 0)),
        # 1-row halo above the tile (clamped at the top; kernel zero-fills)
        pl.BlockSpec((1, 1, W, Cin),
                     lambda n, t: (n, jnp.maximum(t * th - 1, 0), 0, 0)),
    ]
    x_args = [x_nhwc, x_nhwc]
    if stride == 1:
        # bottom halo row only needed for stride 1 (stride-2 taps never read it)
        x_specs.append(pl.BlockSpec(
            (1, 1, W, Cin),
            lambda n, t: (n, jnp.minimum(t * th + th, H - 1), 0, 0)))
        x_args.append(x_nhwc)

    # folded weights / biases: constant index map -> stay resident
    w_specs = [
        pl.BlockSpec((Cin, Cmid), lambda n, t: (0, 0)),
        pl.BlockSpec((1, Cmid), lambda n, t: (0, 0)),
        pl.BlockSpec((9, Cmid), lambda n, t: (0, 0)),
        pl.BlockSpec((1, Cmid), lambda n, t: (0, 0)),
        pl.BlockSpec((Cmid, Cout), lambda n, t: (0, 0)),
        pl.BlockSpec((1, Cout), lambda n, t: (0, 0)),
    ]

    out = pl.pallas_call(
        kernel,
        out_shape=jax.ShapeDtypeStruct((N, Ho, Wo, Cout), out_dtype),
        grid_spec=pltpu.PrefetchScalarGridSpec(
            num_scalar_prefetch=0,
            grid=(N, n_tiles),
            in_specs=x_specs + w_specs,
            out_specs=pl.BlockSpec((1, THo, Wo, Cout), lambda n, t: (n, t, 0, 0)),
            scratch_shapes=[
                # column-0 aligned expanded activation tile (+ halo rows)
                pltpu.VMEM((hp_h, W, Cmid), jnp.float32),
            ],
        ),
        compiler_params=pltpu.CompilerParams(
            dimension_semantics=("parallel", "parallel"),
            vmem_limit_bytes=vmem_limit),
    )(*x_args, w1k, b1, wdwk, bdw, w3k, b3)

    return out


# --------------------------------------------------------------------------
# Parameter construction: PyTorch-shaped weights + eval-mode BN, folded.
# --------------------------------------------------------------------------
def make_params(key, inp, oup, expand_ratio, eps=1e-5):
    cmid = inp * expand_ratio
    kw1, kbn1, kwd, kbn2, kw3, kbn3 = jax.random.split(key, 6)

    def bn(k, c):
        kg, kb, km, kv = jax.random.split(k, 4)
        gamma = 1.0 + 0.1 * jax.random.normal(kg, (c,), jnp.float32)
        beta = 0.1 * jax.random.normal(kb, (c,), jnp.float32)
        mean = 0.1 * jax.random.normal(km, (c,), jnp.float32)
        var = jnp.abs(0.5 + 0.1 * jax.random.normal(kv, (c,), jnp.float32))
        return gamma / jnp.sqrt(var + eps), beta, mean

    # conv1: torch weight [Cmid, Cin, 1, 1]
    w1_t = jax.random.normal(kw1, (cmid, inp), jnp.float32) / math.sqrt(inp)
    s1, be1, m1 = bn(kbn1, cmid)
    w1 = (w1_t * s1[:, None]).T                              # [Cin, Cmid]
    b1 = (be1 - m1 * s1)[None, :]                            # [1, Cmid]

    # depthwise: torch weight [Cmid, 1, 3, 3]
    wdw_t = jax.random.normal(kwd, (cmid, 3, 3), jnp.float32) / 3.0
    s2, be2, m2 = bn(kbn2, cmid)
    wdw = jnp.transpose(wdw_t * s2[:, None, None], (1, 2, 0))  # [3, 3, Cmid]
    bdw = (be2 - m2 * s2)[None, :]                             # [1, Cmid]

    # conv3: torch weight [Cout, Cmid, 1, 1]
    w3_t = jax.random.normal(kw3, (oup, cmid), jnp.float32) / math.sqrt(cmid)
    s3, be3, m3 = bn(kbn3, oup)
    w3 = (w3_t * s3[:, None]).T                              # [Cmid, Cout]
    b3 = (be3 - m3 * s3)[None, :]                            # [1, Cout]

    return (w1, b1, wdw, bdw, w3, b3)


# --------------------------------------------------------------------------
# Pure-JAX reference (lax conv, f32 HIGHEST precision) for correctness.
# --------------------------------------------------------------------------
def inverted_residual_ref(x_nhwc, params, *, stride, use_res):
    w1, b1, wdw, bdw, w3, b3 = params
    cmid = w1.shape[1]
    dn = ("NHWC", "HWIO", "NHWC")
    hp = lax.Precision.HIGHEST
    h = lax.conv_general_dilated(x_nhwc, w1[None, None], (1, 1), "VALID",
                                 dimension_numbers=dn, precision=hp)
    h = jnp.clip(h + b1.reshape(1, 1, 1, -1), 0.0, 6.0)
    h = lax.conv_general_dilated(h, wdw[:, :, None, :], (stride, stride),
                                 ((1, 1), (1, 1)), dimension_numbers=dn,
                                 feature_group_count=cmid, precision=hp)
    h = jnp.clip(h + bdw.reshape(1, 1, 1, -1), 0.0, 6.0)
    y = lax.conv_general_dilated(h, w3[None, None], (1, 1), "VALID",
                                 dimension_numbers=dn, precision=hp)
    y = y + b3.reshape(1, 1, 1, -1)
    if use_res:
        y = y + x_nhwc
    return y


if __name__ == "__main__":
    key = jax.random.PRNGKey(0)
    kx, kp1, kp2 = jax.random.split(key, 3)

    # Config 1: stride=1, inp == oup  ->  residual path.
    N, inp, oup, H, W = 2, 4, 4, 16, 16
    stride, expand_ratio = 1, 6
    use_res = (stride == 1 and inp == oup)

    x_nchw = jax.random.normal(kx, (N, inp, H, W), jnp.float32)   # PyTorch layout
    x_nhwc = jnp.transpose(x_nchw, (0, 2, 3, 1))
    params1 = make_params(kp1, inp, oup, expand_ratio)

    out1 = inverted_residual_pallas(x_nhwc, params1, stride=stride,
                                    use_res=use_res)
    jax.block_until_ready(out1)
    ref1 = inverted_residual_ref(x_nhwc, params1, stride=stride, use_res=use_res)
    # bf16 MXU inputs (f32 accumulation) -> loose tolerance vs the f32 reference.
    np.testing.assert_allclose(np.asarray(out1), np.asarray(ref1),
                               rtol=5e-2, atol=1e-1)

    # Config 2: stride=2, inp != oup  ->  downsampling path, no residual.
    oup2, stride2 = 8, 2
    params2 = make_params(kp2, inp, oup2, expand_ratio)
    out2 = inverted_residual_pallas(x_nhwc, params2, stride=stride2,
                                    use_res=False)
    jax.block_until_ready(out2)
    ref2 = inverted_residual_ref(x_nhwc, params2, stride=stride2, use_res=False)
    np.testing.assert_allclose(np.asarray(out2), np.asarray(ref2),
                               rtol=5e-2, atol=1e-1)

    # Back to the PyTorch NCHW layout for the main configuration.
    out_nchw = jnp.transpose(out1, (0, 3, 1, 2))
    jax.block_until_ready(out_nchw)

    print("KERNEL_OK")
</pallas_src>

<mosaic_0001>
module attributes {stable_mosaic.version = 11 : i64} {
  func.func @_inverted_residual_kernel(%arg0: i32, %arg1: i32, %arg2: memref<1x16x16x4xf32, #tpu.memory_space<vmem>>, %arg3: memref<1x1x16x4xf32, #tpu.memory_space<vmem>>, %arg4: memref<1x1x16x4xf32, #tpu.memory_space<vmem>>, %arg5: memref<4x24xbf16, #tpu.memory_space<vmem>>, %arg6: memref<1x24xf32, #tpu.memory_space<vmem>>, %arg7: memref<9x24xf32, #tpu.memory_space<vmem>>, %arg8: memref<1x24xf32, #tpu.memory_space<vmem>>, %arg9: memref<24x4xbf16, #tpu.memory_space<vmem>>, %arg10: memref<1x4xf32, #tpu.memory_space<vmem>>, %arg11: memref<1x16x16x4xf32, #tpu.memory_space<vmem>>, %arg12: memref<18x16x24xf32, #tpu.memory_space<vmem>>) attributes {dimension_semantics = [#tpu.dimension_semantics<parallel>, #tpu.dimension_semantics<parallel>], iteration_bounds = array<i64: 2, 1>, scalar_prefetch = 0 : i64, scratch_operands = 1 : i64, tpu.core_type = #tpu.core_type<tc>, window_params = [{transform_indices = @transform_0, window_bounds = array<i64: 1, 16, 16, 4>}, {transform_indices = @transform_1, window_bounds = array<i64: 1, 1, 16, 4>}, {transform_indices = @transform_2, window_bounds = array<i64: 1, 1, 16, 4>}, {pipeline_mode = #tpu.pipeline_mode<synchronous>, transform_indices = @transform_3, window_bounds = array<i64: 4, 24>}, {pipeline_mode = #tpu.pipeline_mode<synchronous>, transform_indices = @transform_4, window_bounds = array<i64: 1, 24>}, {pipeline_mode = #tpu.pipeline_mode<synchronous>, transform_indices = @transform_5, window_bounds = array<i64: 9, 24>}, {pipeline_mode = #tpu.pipeline_mode<synchronous>, transform_indices = @transform_6, window_bounds = array<i64: 1, 24>}, {pipeline_mode = #tpu.pipeline_mode<synchronous>, transform_indices = @transform_7, window_bounds = array<i64: 24, 4>}, {pipeline_mode = #tpu.pipeline_mode<synchronous>, transform_indices = @transform_8, window_bounds = array<i64: 1, 4>}, {transform_indices = @transform_9, window_bounds = array<i64: 1, 16, 16, 4>}]} {
    %c0 = arith.constant 0 : index
    %c0_0 = arith.constant 0 : index
    %c0_1 = arith.constant 0 : index
    %c0_2 = arith.constant 0 : index
    %0 = vector.load %arg3[%c0, %c0_0, %c0_1, %c0_2] : memref<1x1x16x4xf32, #tpu.memory_space<vmem>>, vector<1x1x16x4xf32>
    %1 = vector.shape_cast %0 : vector<1x1x16x4xf32> to vector<1x16x4xf32>
    %c0_3 = arith.constant 0 : index
    %c0_4 = arith.constant 0 : index
    %c0_5 = arith.constant 0 : index
    %c0_6 = arith.constant 0 : index
    %2 = vector.load %arg2[%c0_3, %c0_4, %c0_5, %c0_6] : memref<1x16x16x4xf32, #tpu.memory_space<vmem>>, vector<1x16x16x4xf32>
    %3 = vector.shape_cast %2 : vector<1x16x16x4xf32> to vector<16x16x4xf32>
    %c0_7 = arith.constant 0 : index
    %c0_8 = arith.constant 0 : index
    %c0_9 = arith.constant 0 : index
    %c0_10 = arith.constant 0 : index
    %4 = vector.load %arg4[%c0_7, %c0_8, %c0_9, %c0_10] : memref<1x1x16x4xf32, #tpu.memory_space<vmem>>, vector<1x1x16x4xf32>
    %5 = vector.shape_cast %4 : vector<1x1x16x4xf32> to vector<1x16x4xf32>
    %6 = tpu.concatenate %1, %3, %5 in 0 : vector<1x16x4xf32>, vector<16x16x4xf32>, vector<1x16x4xf32> -> vector<18x16x4xf32>
    %7 = vector.shape_cast %6 : vector<18x16x4xf32> to vector<288x4xf32>
    %8 = arith.truncf %7 : vector<288x4xf32> to vector<288x4xbf16>
    %c0_11 = arith.constant 0 : index
    %c0_12 = arith.constant 0 : index
    %9 = vector.load %arg5[%c0_11, %c0_12] : memref<4x24xbf16, #tpu.memory_space<vmem>>, vector<4x24xbf16>
    %cst = arith.constant dense<0.000000e+00> : vector<288x24xf32>
    %10 = tpu.matmul %8, %9, %cst {dimension_numbers = #tpu.dot_dimension_numbers<[1], [0], [0], [1], [0, 0, 1, 1], [], []>} : vector<288x4xbf16>, vector<4x24xbf16>, vector<288x24xf32> -> vector<288x24xf32>
    %c0_13 = arith.constant 0 : index
    %c0_14 = arith.constant 0 : index
    %11 = vector.load %arg6[%c0_13, %c0_14] : memref<1x24xf32, #tpu.memory_space<vmem>>, vector<1x24xf32>
    %12 = vector.broadcast %11 : vector<1x24xf32> to vector<288x24xf32>
    %13 = arith.addf %10, %12 : vector<288x24xf32>
    %cst_15 = arith.constant 0.000000e+00 : f32
    %cst_16 = arith.constant 6.000000e+00 : f32
    %14 = vector.broadcast %cst_15 : f32 to vector<288x24xf32>
    %15 = arith.maximumf %14, %13 : vector<288x24xf32>
    %16 = vector.broadcast %cst_16 : f32 to vector<288x24xf32>
    %17 = arith.minimumf %16, %15 : vector<288x24xf32>
    %18 = vector.shape_cast %17 : vector<288x24xf32> to vector<18x16x24xf32>
    %c0_17 = arith.constant 0 : index
    %c0_18 = arith.constant 0 : index
    %c0_19 = arith.constant 0 : index
    %19 = vector.load %arg12[%c0_17, %c0_18, %c0_19] : memref<18x16x24xf32, #tpu.memory_space<vmem>>, vector<18x16x24xf32>
    tpu.vector_store %arg12[%c0_17, %c0_18, %c0_19], %18 {strides = array<i32>} : memref<18x16x24xf32, #tpu.memory_space<vmem>>, vector<18x16x24xf32>,
    %cst_20 = arith.constant 0.000000e+00 : f32
    %20 = vector.broadcast %cst_20 : f32 to vector<1x16x24xf32>
    %c0_i32 = arith.constant 0 : i32
    %21 = arith.cmpi eq, %arg1, %c0_i32 : i32
    %22 = arith.extui %21 : i1 to i32
    %c0_i32_21 = arith.constant 0 : i32
    %23 = arith.cmpi ne, %22, %c0_i32_21 : i32
    scf.if %23 {
      %c0_73 = arith.constant 0 : index
      %c0_74 = arith.constant 0 : index
      %c0_75 = arith.constant 0 : index
      %121 = vector.load %arg12[%c0_73, %c0_74, %c0_75] : memref<18x16x24xf32, #tpu.memory_space<vmem>>, vector<1x16x24xf32>
      tpu.vector_store %arg12[%c0_73, %c0_74, %c0_75], %20 {strides = array<i32>} : memref<18x16x24xf32, #tpu.memory_space<vmem>>, vector<1x16x24xf32>,
    } else {
    }
    %c0_i32_22 = arith.constant 0 : i32
    %24 = arith.cmpi eq, %arg1, %c0_i32_22 : i32
    %25 = arith.extui %24 : i1 to i32
    %c0_i32_23 = arith.constant 0 : i32
    %26 = arith.cmpi ne, %25, %c0_i32_23 : i32
    scf.if %26 {
      %c17 = arith.constant 17 : index
      %c0_73 = arith.constant 0 : index
      %c0_74 = arith.constant 0 : index
      %121 = vector.load %arg12[%c17, %c0_73, %c0_74] : memref<18x16x24xf32, #tpu.memory_space<vmem>>, vector<1x16x24xf32>
      tpu.vector_store %arg12[%c17, %c0_73, %c0_74], %20 {strides = array<i32>} : memref<18x16x24xf32, #tpu.memory_space<vmem>>, vector<1x16x24xf32>,
    } else {
    }
    %27 = tpu.iota {dimensions = array<i32: 1>} : vector<16x16x24xi32>
    %c0_i32_24 = arith.constant 0 : i32
    %28 = vector.broadcast %c0_i32_24 : i32 to vector<16x16x24xi32>
    %29 = arith.cmpi eq, %27, %28 : vector<16x16x24xi32>
    %c15_i32 = arith.constant 15 : i32
    %30 = vector.broadcast %c15_i32 : i32 to vector<16x16x24xi32>
    %31 = arith.cmpi eq, %27, %30 : vector<16x16x24xi32>
    %cst_25 = arith.constant 0.000000e+00 : f32
    %32 = vector.broadcast %cst_25 : f32 to vector<16x16x24xf32>
    %c0_26 = arith.constant 0 : index
    %c0_27 = arith.constant 0 : index
    %c0_28 = arith.constant 0 : index
    %33 = vector.load %arg12[%c0_26, %c0_27, %c0_28] : memref<18x16x24xf32, #tpu.memory_space<vmem>>, vector<16x16x24xf32>
    %c1_i32 = arith.constant 1 : i32
    %34 = tpu.dynamic_rotate %33 by %c1_i32 dim 1 : vector<16x16x24xf32>, i32 -> vector<16x16x24xf32>
    %cst_29 = arith.constant 0.000000e+00 : f32
    %35 = vector.broadcast %cst_29 : f32 to vector<16x16x24xf32>
    %36 = arith.select %29, %35, %34 : vector<16x16x24xi1>, vector<16x16x24xf32>
    %c15_i32_30 = arith.constant 15 : i32
    %37 = tpu.dynamic_rotate %33 by %c15_i32_30 dim 1 : vector<16x16x24xf32>, i32 -> vector<16x16x24xf32>
    %cst_31 = arith.constant 0.000000e+00 : f32
    %38 = vector.broadcast %cst_31 : f32 to vector<16x16x24xf32>
    %39 = arith.select %31, %38, %37 : vector<16x16x24xi1>, vector<16x16x24xf32>
    %c0_32 = arith.constant 0 : index
    %c0_33 = arith.constant 0 : index
    %40 = vector.load %arg7[%c0_32, %c0_33] : memref<9x24xf32, #tpu.memory_space<vmem>>, vector<1x24xf32>
    %41 = vector.shape_cast %40 : vector<1x24xf32> to vector<1x1x24xf32>
    %42 = vector.broadcast %41 : vector<1x1x24xf32> to vector<16x16x24xf32>
    %43 = arith.mulf %36, %42 : vector<16x16x24xf32>
    %44 = arith.addf %32, %43 : vector<16x16x24xf32>
    %c1 = arith.constant 1 : index
    %c0_34 = arith.constant 0 : index
    %45 = vector.load %arg7[%c1, %c0_34] : memref<9x24xf32, #tpu.memory_space<vmem>>, vector<1x24xf32>
    %46 = vector.shape_cast %45 : vector<1x24xf32> to vector<1x1x24xf32>
    %47 = vector.broadcast %46 : vector<1x1x24xf32> to vector<16x16x24xf32>
    %48 = arith.mulf %33, %47 : vector<16x16x24xf32>
    %49 = arith.addf %44, %48 : vector<16x16x24xf32>
    %c2 = arith.constant 2 : index
    %c0_35 = arith.constant 0 : index
    %50 = vector.load %arg7[%c2, %c0_35] : memref<9x24xf32, #tpu.memory_space<vmem>>, vector<1x24xf32>
    %51 = vector.shape_cast %50 : vector<1x24xf32> to vector<1x1x24xf32>
    %52 = vector.broadcast %51 : vector<1x1x24xf32> to vector<16x16x24xf32>
    %53 = arith.mulf %39, %52 : vector<16x16x24xf32>
    %54 = arith.addf %49, %53 : vector<16x16x24xf32>
    %c1_36 = arith.constant 1 : index
    %c0_37 = arith.constant 0 : index
    %c0_38 = arith.constant 0 : index
    %55 = vector.load %arg12[%c1_36, %c0_37, %c0_38] : memref<18x16x24xf32, #tpu.memory_space<vmem>>, vector<16x16x24xf32>
    %c1_i32_39 = arith.constant 1 : i32
    %56 = tpu.dynamic_rotate %55 by %c1_i32_39 dim 1 : vector<16x16x24xf32>, i32 -> vector<16x16x24xf32>
    %cst_40 = arith.constant 0.000000e+00 : f32
    %57 = vector.broadcast %cst_40 : f32 to vector<16x16x24xf32>
    %58 = arith.select %29, %57, %56 : vector<16x16x24xi1>, vector<16x16x24xf32>
    %c15_i32_41 = arith.constant 15 : i32
    %59 = tpu.dynamic_rotate %55 by %c15_i32_41 dim 1 : vector<16x16x24xf32>, i32 -> vector<16x16x24xf32>
    %cst_42 = arith.constant 0.000000e+00 : f32
    %60 = vector.broadcast %cst_42 : f32 to vector<16x16x24xf32>
    %61 = arith.select %31, %60, %59 : vector<16x16x24xi1>, vector<16x16x24xf32>
    %c3 = arith.constant 3 : index
    %c0_43 = arith.constant 0 : index
    %62 = vector.load %arg7[%c3, %c0_43] : memref<9x24xf32, #tpu.memory_space<vmem>>, vector<1x24xf32>
    %63 = vector.shape_cast %62 : vector<1x24xf32> to vector<1x1x24xf32>
    %64 = vector.broadcast %63 : vector<1x1x24xf32> to vector<16x16x24xf32>
    %65 = arith.mulf %58, %64 : vector<16x16x24xf32>
    %66 = arith.addf %54, %65 : vector<16x16x24xf32>
    %c4 = arith.constant 4 : index
    %c0_44 = arith.constant 0 : index
    %67 = vector.load %arg7[%c4, %c0_44] : memref<9x24xf32, #tpu.memory_space<vmem>>, vector<1x24xf32>
    %68 = vector.shape_cast %67 : vector<1x24xf32> to vector<1x1x24xf32>
    %69 = vector.broadcast %68 : vector<1x1x24xf32> to vector<16x16x24xf32>
    %70 = arith.mulf %55, %69 : vector<16x16x24xf32>
    %71 = arith.addf %66, %70 : vector<16x16x24xf32>
    %c5 = arith.constant 5 : index
    %c0_45 = arith.constant 0 : index
    %72 = vector.load %arg7[%c5, %c0_45] : memref<9x24xf32, #tpu.memory_space<vmem>>, vector<1x24xf32>
    %73 = vector.shape_cast %72 : vector<1x24xf32> to vector<1x1x24xf32>
    %74 = vector.broadcast %73 : vector<1x1x24xf32> to vector<16x16x24xf32>
    %75 = arith.mulf %61, %74 : vector<16x16x24xf32>
    %76 = arith.addf %71, %75 : vector<16x16x24xf32>
    %c2_46 = arith.constant 2 : index
    %c0_47 = arith.constant 0 : index
    %c0_48 = arith.constant 0 : index
    %77 = vector.load %arg12[%c2_46, %c0_47, %c0_48] : memref<18x16x24xf32, #tpu.memory_space<vmem>>, vector<16x16x24xf32>
    %c1_i32_49 = arith.constant 1 : i32
    %78 = tpu.dynamic_rotate %77 by %c1_i32_49 dim 1 : vector<16x16x24xf32>, i32 -> vector<16x16x24xf32>
    %cst_50 = arith.constant 0.000000e+00 : f32
    %79 = vector.broadcast %cst_50 : f32 to vector<16x16x24xf32>
    %80 = arith.select %29, %79, %78 : vector<16x16x24xi1>, vector<16x16x24xf32>
    %c15_i32_51 = arith.constant 15 : i32
    %81 = tpu.dynamic_rotate %77 by %c15_i32_51 dim 1 : vector<16x16x24xf32>, i32 -> vector<16x16x24xf32>
    %cst_52 = arith.constant 0.000000e+00 : f32
    %82 = vector.broadcast %cst_52 : f32 to vector<16x16x24xf32>
    %83 = arith.select %31, %82, %81 : vector<16x16x24xi1>, vector<16x16x24xf32>
    %c6 = arith.constant 6 : index
    %c0_53 = arith.constant 0 : index
    %84 = vector.load %arg7[%c6, %c0_53] : memref<9x24xf32, #tpu.memory_space<vmem>>, vector<1x24xf32>
    %85 = vector.shape_cast %84 : vector<1x24xf32> to vector<1x1x24xf32>
    %86 = vector.broadcast %85 : vector<1x1x24xf32> to vector<16x16x24xf32>
    %87 = arith.mulf %80, %86 : vector<16x16x24xf32>
    %88 = arith.addf %76, %87 : vector<16x16x24xf32>
    %c7 = arith.constant 7 : index
    %c0_54 = arith.constant 0 : index
    %89 = vector.load %arg7[%c7, %c0_54] : memref<9x24xf32, #tpu.memory_space<vmem>>, vector<1x24xf32>
    %90 = vector.shape_cast %89 : vector<1x24xf32> to vector<1x1x24xf32>
    %91 = vector.broadcast %90 : vector<1x1x24xf32> to vector<16x16x24xf32>
    %92 = arith.mulf %77, %91 : vector<16x16x24xf32>
    %93 = arith.addf %88, %92 : vector<16x16x24xf32>
    %c8 = arith.constant 8 : index
    %c0_55 = arith.constant 0 : index
    %94 = vector.load %arg7[%c8, %c0_55] : memref<9x24xf32, #tpu.memory_space<vmem>>, vector<1x24xf32>
    %95 = vector.shape_cast %94 : vector<1x24xf32> to vector<1x1x24xf32>
    %96 = vector.broadcast %95 : vector<1x1x24xf32> to vector<16x16x24xf32>
    %97 = arith.mulf %83, %96 : vector<16x16x24xf32>
    %98 = arith.addf %93, %97 : vector<16x16x24xf32>
    %c0_56 = arith.constant 0 : index
    %c0_57 = arith.constant 0 : index
    %99 = vector.load %arg8[%c0_56, %c0_57] : memref<1x24xf32, #tpu.memory_space<vmem>>, vector<1x24xf32>
    %100 = vector.shape_cast %99 : vector<1x24xf32> to vector<1x1x24xf32>
    %101 = vector.broadcast %100 : vector<1x1x24xf32> to vector<16x16x24xf32>
    %102 = arith.addf %98, %101 : vector<16x16x24xf32>
    %cst_58 = arith.constant 0.000000e+00 : f32
    %cst_59 = arith.constant 6.000000e+00 : f32
    %103 = vector.broadcast %cst_58 : f32 to vector<16x16x24xf32>
    %104 = arith.maximumf %103, %102 : vector<16x16x24xf32>
    %105 = vector.broadcast %cst_59 : f32 to vector<16x16x24xf32>
    %106 = arith.minimumf %105, %104 : vector<16x16x24xf32>
    %107 = vector.shape_cast %106 : vector<16x16x24xf32> to vector<256x24xf32>
    %108 = arith.truncf %107 : vector<256x24xf32> to vector<256x24xbf16>
    %c0_60 = arith.constant 0 : index
    %c0_61 = arith.constant 0 : index
    %109 = vector.load %arg9[%c0_60, %c0_61] : memref<24x4xbf16, #tpu.memory_space<vmem>>, vector<24x4xbf16>
    %cst_62 = arith.constant dense<0.000000e+00> : vector<256x4xf32>
    %110 = tpu.matmul %108, %109, %cst_62 {dimension_numbers = #tpu.dot_dimension_numbers<[1], [0], [0], [1], [0, 0, 1, 1], [], []>} : vector<256x24xbf16>, vector<24x4xbf16>, vector<256x4xf32> -> vector<256x4xf32>
    %c0_63 = arith.constant 0 : index
    %c0_64 = arith.constant 0 : index
    %111 = vector.load %arg10[%c0_63, %c0_64] : memref<1x4xf32, #tpu.memory_space<vmem>>, vector<1x4xf32>
    %112 = vector.broadcast %111 : vector<1x4xf32> to vector<256x4xf32>
    %113 = arith.addf %110, %112 : vector<256x4xf32>
    %114 = vector.shape_cast %113 : vector<256x4xf32> to vector<16x16x4xf32>
    %c0_65 = arith.constant 0 : index
    %c0_66 = arith.constant 0 : index
    %c0_67 = arith.constant 0 : index
    %c0_68 = arith.constant 0 : index
    %115 = vector.load %arg2[%c0_65, %c0_66, %c0_67, %c0_68] : memref<1x16x16x4xf32, #tpu.memory_space<vmem>>, vector<1x16x16x4xf32>
    %116 = vector.shape_cast %115 : vector<1x16x16x4xf32> to vector<16x16x4xf32>
    %117 = arith.addf %114, %116 : vector<16x16x4xf32>
    %c0_69 = arith.constant 0 : index
    %c0_70 = arith.constant 0 : index
    %c0_71 = arith.constant 0 : index
    %c0_72 = arith.constant 0 : index
    %118 = vector.load %arg11[%c0_69, %c0_70, %c0_71, %c0_72] : memref<1x16x16x4xf32, #tpu.memory_space<vmem>>, vector<1x16x16x4xf32>
    %119 = vector.shape_cast %118 : vector<1x16x16x4xf32> to vector<16x16x4xf32>
    %120 = vector.shape_cast %117 : vector<16x16x4xf32> to vector<1x16x16x4xf32>
    tpu.vector_store %arg11[%c0_69, %c0_70, %c0_71, %c0_72], %120 {strides = array<i32>} : memref<1x16x16x4xf32, #tpu.memory_space<vmem>>, vector<1x16x16x4xf32>,
    return
  }
  func.func @transform_0(%arg0: i32, %arg1: i32) -> (i32, i32, i32, i32) {
    %c0_i32 = arith.constant 0 : i32
    %c0_i32_0 = arith.constant 0 : i32
    %c0_i32_1 = arith.constant 0 : i32
    return %arg0, %arg1, %c0_i32, %c0_i32_0 : i32, i32, i32, i32
  }
  func.func @transform_1(%arg0: i32, %arg1: i32) -> (i32, i32, i32, i32) {
    %c16_i32 = arith.constant 16 : i32
    %0 = arith.muli %arg1, %c16_i32 : i32
    %c1_i32 = arith.constant 1 : i32
    %1 = arith.subi %0, %c1_i32 : i32
    %c0_i32 = arith.constant 0 : i32
    %2 = arith.maxsi %1, %c0_i32 : i32
    %c0_i32_0 = arith.constant 0 : i32
    %c0_i32_1 = arith.constant 0 : i32
    %c0_i32_2 = arith.constant 0 : i32
    return %arg0, %2, %c0_i32_0, %c0_i32_1 : i32, i32, i32, i32
  }
  func.func @transform_2(%arg0: i32, %arg1: i32) -> (i32, i32, i32, i32) {
    %c16_i32 = arith.constant 16 : i32
    %0 = arith.muli %arg1, %c16_i32 : i32
    %c16_i32_0 = arith.constant 16 : i32
    %1 = arith.addi %0, %c16_i32_0 : i32
    %c15_i32 = arith.constant 15 : i32
    %2 = arith.minsi %1, %c15_i32 : i32
    %c0_i32 = arith.constant 0 : i32
    %c0_i32_1 = arith.constant 0 : i32
    %c0_i32_2 = arith.constant 0 : i32
    return %arg0, %2, %c0_i32, %c0_i32_1 : i32, i32, i32, i32
  }
  func.func @transform_3(%arg0: i32, %arg1: i32) -> (i32, i32) {
    %c0_i32 = arith.constant 0 : i32
    %c0_i32_0 = arith.constant 0 : i32
    %c0_i32_1 = arith.constant 0 : i32
    return %c0_i32, %c0_i32_0 : i32, i32
  }
  func.func @transform_4(%arg0: i32, %arg1: i32) -> (i32, i32) {
    %c0_i32 = arith.constant 0 : i32
    %c0_i32_0 = arith.constant 0 : i32
    %c0_i32_1 = arith.constant 0 : i32
    return %c0_i32, %c0_i32_0 : i32, i32
  }
  func.func @transform_5(%arg0: i32, %arg1: i32) -> (i32, i32) {
    %c0_i32 = arith.constant 0 : i32
    %c0_i32_0 = arith.constant 0 : i32
    %c0_i32_1 = arith.constant 0 : i32
    return %c0_i32, %c0_i32_0 : i32, i32
  }
  func.func @transform_6(%arg0: i32, %arg1: i32) -> (i32, i32) {
    %c0_i32 = arith.constant 0 : i32
    %c0_i32_0 = arith.constant 0 : i32
    %c0_i32_1 = arith.constant 0 : i32
    return %c0_i32, %c0_i32_0 : i32, i32
  }
  func.func @transform_7(%arg0: i32, %arg1: i32) -> (i32, i32) {
    %c0_i32 = arith.constant 0 : i32
    %c0_i32_0 = arith.constant 0 : i32
    %c0_i32_1 = arith.constant 0 : i32
    return %c0_i32, %c0_i32_0 : i32, i32
  }
  func.func @transform_8(%arg0: i32, %arg1: i32) -> (i32, i32) {
    %c0_i32 = arith.constant 0 : i32
    %c0_i32_0 = arith.constant 0 : i32
    %c0_i32_1 = arith.constant 0 : i32
    return %c0_i32, %c0_i32_0 : i32, i32
  }
  func.func @transform_9(%arg0: i32, %arg1: i32) -> (i32, i32, i32, i32) {
    %c0_i32 = arith.constant 0 : i32
    %c0_i32_0 = arith.constant 0 : i32
    %c0_i32_1 = arith.constant 0 : i32
    return %arg0, %arg1, %c0_i32, %c0_i32_0 : i32, i32, i32, i32
  }
}

</mosaic_0001>

<bundles_post_ra>
// kernel: tpu_custom_call.1
= control target key start
LH: loop header
LB: loop body
LE: loop exit
PB: predicated region body
PF: predicated region fallthrough
CT: control target
= control target key end

     0   :  { %s3101_s30 = smov 0   ;;  %s3103_s10 = smov 0   ;;  %s4619_s0 = inlined_call_operand.vmem [shape: f32[2,16,16,4], index: 0, kind: input, shape index: {}]   ;;  %s4620_s1 = inlined_call_operand.vmem [shape: f32[2,16,16,4], index: 1, kind: input, shape index: {}]   ;;  %s4621_s2 = inlined_call_operand.vmem [shape: f32[2,16,16,4], index: 2, kind: input, shape index: {}]   ;;  %s4622_s3 = inlined_call_operand.vmem [shape: bf16[4,24], index: 3, kind: input, shape index: {}]   ;;  %s4623_s4 = inlined_call_operand.vmem [shape: f32[1,24], index: 4, kind: input, shape index: {}]   ;;  %s4624_s5 = inlined_call_operand.vmem [shape: f32[9,24], index: 5, kind: input, shape index: {}]   ;;  %s4625_s6 = inlined_call_operand.vmem [shape: f32[1,24], index: 6, kind: input, shape index: {}]   ;;  %s4626_s7 = inlined_call_operand.vmem [shape: bf16[24,4], index: 7, kind: input, shape index: {}]   ;;  %s4627_s8 = inlined_call_operand.vmem [shape: f32[1,4], index: 8, kind: input, shape index: {}]   ;;  %s4628_s9 = inlined_call_operand.vmem [shape: f32[2,16,16,4], index: 9, kind: output, shape index: {}]  }
   0x1   :  { %s3105_s11 = smov 0  }
   0x2 LB: > { %s31_s12 = sadd.s32 1, %s3044_s10  ;;  %p2811_p0 = scmp.ge.s32.totalorder %s3048_s11, 1  ;;  %s3048_s11 = sphi %s3105_s11, %s19_s11   ;;  %s3044_s10 = sphi %s3103_s10, %s4630_s10   ;;  %s3040_s30 = sphi %s3101_s30, %s4629_s30  }
   0x3   : > { %p33_p1 = scmp.ge.s32.totalorder %s31_s12, 2  ;;  %p373_p2 = scmp.lt.s32.totalorder %s3048_s11, 3 }
   0x5   : > { %s4632_s12 = smov (%p33_p1, %s31_s12), 0  ;;  %p374_p3 = pnand %p2811_p0, %p373_p2 }
   0x6   : > { %v556_v0 = vld [vmem:[%s4622_s3] sm:$0x3] (!%p374_p3)  ;;  %vm619_vm0 = vcmask (!%p374_p3), 1041408   ;;  %p446_p4 = scmp.lt.s32.totalorder (!%p374_p3), %s3040_s30, 1  ;;  %vm564_vm1 = vcmask (!%p374_p3), 31744   ;;  %vm2408_vm2 = vcmask (!%p374_p3), 1043456  }
   0x7   : > { %377 = sbr.rel (%p374_p3) target bundleno = 709 (0x2c5), region = 56  ;;  %2987 = vmatprep.subr.msk.bf16.mxu0 (!%p374_p3), %vm619_vm0, %v556_v0  ;;  %v621_v1 = vsel (!%p374_p3), %vm619_vm0, %v556_v0, 0  ;;  %v3014_v56 = vld [vmem:[%s4626_s7] sm:$0xff] (!%p374_p3)   ;;  %v3015_v57 = vld [vmem:[%s4626_s7 + $0x8] ss:$0 sps:$4 sm:$0xff] (!%p374_p3)   ;;  %vm872_vm3 = vcmask (!%p374_p3), 195584  }
   0x8   : > { %2914 = vmatpush3.bf16.msra.mxu0 (!%p374_p3), %v621_v1  ;;  %2951 = vmatprep.subr.bf16.mxu1 (!%p374_p3), %v3014_v56  ;;  %v2410_v58 = vsel (!%p374_p3), %vm2408_vm2, %v3015_v57, 0  ;;  %v3197_v59 = vld [vmem:[%s4623_s4] ss:$0 sm:$0xff] (!%p374_p3) }
   0x9   : > { %2952 = vmatpush3.bf16.msra.mxu1 (!%p374_p3), %v3014_v56 }
   0xa   : > { %2988 = vmatprep.subr.msk.bf16.mxu1 (!%p374_p3), %vm2408_vm2, %v3015_v57 }
   0xd   : > { %2954 = vmatpush3.bf16.msra.mxu1 (!%p374_p3), %v2410_v58 }
   0xe   : > { %s4634_s30 = smov (!%p446_p4, %s3040_s30), 1 }
   0xf   : > { %s3122_s15 = sshll.u32 %s4634_s30, 8 }
  0x10   : > { %s3128_s18 = scalar_lea.vmem %s4619_s0, %s3122_s15  ;;  %s468_s21 = scalar_lea.vmem %s4620_s1, %s3122_s15 }
  0x11   : > { %v502_v2 = vld [vmem:[%s468_s21] sm:$0xff]  ;;  %v503_v3 = vld [vmem:[%s468_s21 + $0x8] sm:$0xff]  ;;  %v506_v7 = vld [vmem:[%s3128_s18 + $0x10] sm:$0xff]  ;;  %s2873_s22 = sadd.s32 240, %s3122_s15  ;;  %s4483_s28 = scalar_lea.vmem %s4628_s9, %s3122_s15 }
  0x12   : > { %v504_v4 = vld [vmem:[%s3128_s18] sm:$0xff]  ;;  %v538_v5 = vpack.c.bf16 %v503_v3, %v502_v2  ;;  %v505_v6 = vld [vmem:[%s3128_s18 + $0x8] sm:$0xff]  ;;  %v507_v8 = vld [vmem:[%s3128_s18 + $0x18] sm:$0xff]  ;;  %s485_s25 = scalar_lea.vmem %s4621_s2, %s2873_s22 }
  0x13   : > { %v539_v9 = vpack.c.bf16 %v505_v6, %v504_v4  ;;  %v540_v10 = vpack.c.bf16 %v507_v8, %v506_v7  ;;  %v508_v11 = vld [vmem:[%s3128_s18 + $0x20] sm:$0xff]  ;;  %v509_v12 = vld [vmem:[%s3128_s18 + $0x28] sm:$0xff]  ;;  %v510_v13 = vld [vmem:[%s3128_s18 + $0x30] sm:$0xff]  ;;  %v918_v4 = vlaneseq }
  0x14   : > { %2915 = vmatprep.mubr.msk.bf16.mxu0 %vm564_vm1, %v538_v5  ;;  %v511_v14 = vld [vmem:[%s3128_s18 + $0x38] sm:$0xff]  ;;  %v541_v15 = vpack.c.bf16 %v509_v12, %v508_v11  ;;  %v512_v17 = vld [vmem:[%s3128_s18 + $0x40] sm:$0xff]  ;;  %v513_v18 = vld [vmem:[%s3128_s18 + $0x48] sm:$0xff] }
  0x15   : > { %2916 = vmatmul.mubr.msk.bf16.vlgmr.msra.gmra.mrb[0].mxu0 %vm564_vm1, %v539_v9  ;;  %v542_v16 = vpack.c.bf16 %v511_v14, %v510_v13  ;;  %v514_v19 = vld [vmem:[%s3128_s18 + $0x50] sm:$0xff]  ;;  %v515_v20 = vld [vmem:[%s3128_s18 + $0x58] sm:$0xff]  ;;  %v543_v21 = vpack.c.bf16 %v513_v18, %v512_v17  ;;  %v516_v23 = vld [vmem:[%s3128_s18 + $0x60] sm:$0xff]  ;;  %v3204_v12 = vshrl.u32 %v918_v4, 7 }
  0x16   : > { %2919 = vmatprep.mubr.msk.bf16.mxu0 %vm564_vm1, %v540_v10  ;;  %v544_v22 = vpack.c.bf16 %v515_v20, %v514_v19  ;;  %v517_v24 = vld [vmem:[%s3128_s18 + $0x68] sm:$0xff]  ;;  %v518_v25 = vld [vmem:[%s3128_s18 + $0x70] sm:$0xff]  ;;  %v519_v26 = vld [vmem:[%s3128_s18 + $0x78] sm:$0xff] }
  0x17   : > { %v545_v27 = vpack.c.bf16 %v517_v24, %v516_v23  ;;  %v546_v28 = vpack.c.bf16 %v519_v26, %v518_v25  ;;  %v520_v29 = vld [vmem:[%s3128_s18 + $0x80] sm:$0xff]  ;;  %v521_v30 = vld [vmem:[%s3128_s18 + $0x88] sm:$0xff]  ;;  %v522_v31 = vld [vmem:[%s3128_s18 + $0x90] sm:$0xff]  ;;  %v3217_v23 = vadd.s32 8, %v3204_v12  ;;  %vm989_vm4 = vcmp.lt.s32.totalorder %v3204_v12, 1 }
  0x18   : > { %v523_v32 = vld [vmem:[%s3128_s18 + $0x98] sm:$0xff]  ;;  %v547_v33 = vpack.c.bf16 %v521_v30, %v520_v29  ;;  %v524_v35 = vld [vmem:[%s3128_s18 + $0xa0] sm:$0xff]  ;;  %v525_v36 = vld [vmem:[%s3128_s18 + $0xa8] sm:$0xff]  ;;  %vm1086_vm5 = vcmp.lt.s32.totalorder %v3204_v12, 7  ;;  %vm921_vm6 = vcmp.eq.s32.totalorder %v3204_v12, 0 }
  0x19   : > { %v548_v34 = vpack.c.bf16 %v523_v32, %v522_v31  ;;  %v526_v37 = vld [vmem:[%s3128_s18 + $0xb0] sm:$0xff]  ;;  %v527_v38 = vld [vmem:[%s3128_s18 + $0xb8] sm:$0xff]  ;;  %v549_v39 = vpack.c.bf16 %v525_v36, %v524_v35  ;;  %v528_v41 = vld [vmem:[%s3128_s18 + $0xc0] sm:$0xff]  ;;  %vm924_vm7 = vcmp.eq.s32.totalorder %v3217_v23, 15 }
  0x1a   : > { %v550_v40 = vpack.c.bf16 %v527_v38, %v526_v37  ;;  %v529_v42 = vld [vmem:[%s3128_s18 + $0xc8] sm:$0xff]  ;;  %v530_v43 = vld [vmem:[%s3128_s18 + $0xd0] sm:$0xff]  ;;  %v531_v44 = vld [vmem:[%s3128_s18 + $0xd8] sm:$0xff] }
  0x1b   : > { %v551_v45 = vpack.c.bf16 %v529_v42, %v528_v41  ;;  %v552_v46 = vpack.c.bf16 %v531_v44, %v530_v43  ;;  %v532_v47 = vld [vmem:[%s3128_s18 + $0xe0] sm:$0xff]  ;;  %v533_v48 = vld [vmem:[%s3128_s18 + $0xe8] sm:$0xff]  ;;  %v534_v49 = vld [vmem:[%s3128_s18 + $0xf0] sm:$0xff] }
  0x1c   : > { %v535_v50 = vld [vmem:[%s3128_s18 + $0xf8] sm:$0xff]  ;;  %v553_v51 = vpack.c.bf16 %v533_v48, %v532_v47  ;;  %v536_v53 = vld [vmem:[%s485_s25] sm:$0xff]  ;;  %v537_v54 = vld [vmem:[%s485_s25 + $0x8] sm:$0xff] }
  0x1d   : > { %2920 = vmatmul.mubr.msk.bf16.gmra.mrb[4].mxu0 %vm564_vm1, %v541_v15  ;;  %v554_v52 = vpack.c.bf16 %v535_v50, %v534_v49  ;;  %v555_v55 = vpack.c.bf16 %v537_v54, %v536_v53  ;;  %v3050_v15 = vmov 0.0   ;;  %v3228_v29 = vld [vmem:[%s4624_s5 + $0x4] ss:$0 sm:$0xff] }
  0x1e   : > { %2923 = vmatprep.mubr.msk.bf16.mxu0 %vm564_vm1, %v542_v16 }
  0x25   : > { %2924 = vmatmul.mubr.msk.bf16.gmra.mrb[8].mxu0 %vm564_vm1, %v543_v21 }
  0x26   : > { %2927 = vmatprep.mubr.msk.bf16.mxu0 %vm564_vm1, %v544_v22 }
  0x2d   : > { %2928 = vmatmul.mubr.msk.bf16.gmra.mrb[12].mxu0 %vm564_vm1, %v545_v27 }
  0x2e   : > { %2931 = vmatprep.mubr.msk.bf16.mxu0 %vm564_vm1, %v546_v28  ;;  %v3223_v28 = vld [vmem:[%s4624_s5 + $0x1] ss:$0 sm:$0xff] }
  0x35   : > { %2932 = vmatmul.mubr.msk.bf16.gmra.mrb[16].mxu0 %vm564_vm1, %v547_v33 }
  0x36   : > { %2935 = vmatprep.mubr.msk.bf16.mxu0 %vm564_vm1, %v548_v34 }
  0x3d   : > { %2936 = vmatmul.mubr.msk.bf16.gmra.mrb[20].mxu0 %vm564_vm1, %v549_v39 }
  0x3e   : > { %2939 = vmatprep.mubr.msk.bf16.mxu0 %vm564_vm1, %v550_v40 }
  0x45   : > { %2940 = vmatmul.mubr.msk.bf16.gmra.mrb[24].mxu0 %vm564_vm1, %v551_v45 }
  0x46   : > { %2943 = vmatprep.mubr.msk.bf16.mxu0 %vm564_vm1, %v552_v46 }
  0x4d   : > { %2944 = vmatmul.mubr.msk.bf16.gmra.mrb[28].mxu0 %vm564_vm1, %v553_v51 }
  0x4e   : > { %2947 = vmatprep.mubr.msk.bf16.mxu0 %vm564_vm1, %v554_v52 }
  0x55   : > { %2948 = vmatmul.mubr.msk.bf16.gmra.mrb[32].mxu0 %vm564_vm1, %v555_v55 }
  0xe8   : > { %v2917_v60 = vpop.f32.mrb[0].mxu0 }
  0xe9   : > { %v666_v61 = vadd.f32 %v2917_v60, %v3197_v59  ;;  %v657_v62 = vpop.f32.mrb[1].mxu0 }
  0xea   : > { %v658_v63 = vadd.f32 %v3197_v59, %v657_v62  ;;  %v2918_v0 = vpop.f32.mrb[2].mxu0 }
  0xeb   : > { %v802_v1 = vmax.f32 %v666_v61, 0.0  ;;  %v669_v2 = vadd.f32 %v2918_v0, %v3197_v59  ;;  %v660_v3 = vpop.f32.mrb[3].mxu0 }
  0xec   : > { %v800_v5 = vmax.f32 %v658_v63, 0.0  ;;  %v661_v6 = vadd.f32 %v3197_v59, %v660_v3 }
  0xed   : > { %v838_v7 = vmin.f32 %v802_v1, 6.0  ;;  %v803_v8 = vmax.f32 %v669_v2, 0.0 }
  0xee   : > { %v836_v9 = vmin.f32 %v800_v5, 6.0  ;;  %v801_v10 = vmax.f32 %v661_v6, 0.0 }
  0xef   : > { %875 = vst.msk [vmem:[#allocation2 + $0x10] sm:$0xff] %vm872_vm3, %v838_v7  ;;  %v839_v11 = vmin.f32 %v803_v8, 6.0  ;;  %v3279_v7 = vld [vmem:[%s4624_s5] ss:$0 sm:$0xff] }
  0xf0   : > { %873 = vst.msk [vmem:[#allocation2] sm:$0xff] %vm872_vm3, %v836_v9  ;;  %v837_v13 = vmin.f32 %v801_v10, 6.0  ;;  %v2921_v14 = vpop.f32.mrb[4].mxu0 }
  0xf1   : > { %913 = vst.msk [vmem:[#allocation2] sm:$0xff] %vm872_vm3, %v3050_v15  ;;  %876 = vst.msk [vmem:[#allocation2 + $0x18] sm:$0xff] %vm872_vm3, %v839_v11  ;;  %v682_v16 = vadd.f32 %v2921_v14, %v3197_v59  ;;  %v673_v17 = vpop.f32.mrb[5].mxu0 }
  0xf2   : > { %874 = vst.msk [vmem:[#allocation2 + $0x8] sm:$0xff] %vm872_vm3, %v837_v13  ;;  %v674_v18 = vadd.f32 %v3197_v59, %v673_v17  ;;  %v2922_v19 = vpop.f32.mrb[6].mxu0  ;;  %v3289_v13 = vld [vmem:[%s4624_s5 + $0x2] ss:$0 sm:$0xff] }
  0xf3   : > { %914 = vst.msk [vmem:[#allocation2 + $0x8] sm:$0xff] %vm872_vm3, %v3050_v15  ;;  %v806_v20 = vmax.f32 %v682_v16, 0.0  ;;  %v685_v21 = vadd.f32 %v2922_v19, %v3197_v59  ;;  %v676_v22 = vpop.f32.mrb[7].mxu0 }
  0xf4   : > { %v804_v24 = vmax.f32 %v674_v18, 0.0  ;;  %v677_v25 = vadd.f32 %v3197_v59, %v676_v22 }
  0xf5   : > { %v842_v26 = vmin.f32 %v806_v20, 6.0  ;;  %v807_v27 = vmax.f32 %v685_v21, 0.0 }
  0xf6   : > { %v840_v30 = vmin.f32 %v804_v24, 6.0  ;;  %v805_v31 = vmax.f32 %v677_v25, 0.0  ;;  %v3232_v32 = vld [vmem:[#allocation2 + $0x10] sm:$0xff] }
  0xf7   : > { %879 = vst.msk [vmem:[#allocation2 + $0x30] sm:$0xff] %vm872_vm3, %v842_v26  ;;  %v843_v33 = vmin.f32 %v807_v27, 6.0  ;;  %v1391_v34 = vrot.slane %v3232_v32, 7  ;;  %v1487_v39 = vrot.slane %v3232_v32, 1  ;;  %v3244_v40 = vmul.f32 %v3228_v29, %v3232_v32  ;;  %v3303_v26 = vld [vmem:[%s4624_s5 + $0x3] ss:$0 sm:$0xff] }
  0xf8   : > { %877 = vst.msk [vmem:[#allocation2 + $0x20] sm:$0xff] %vm872_vm3, %v840_v30  ;;  %v841_v35 = vmin.f32 %v805_v31, 6.0  ;;  %v2925_v36 = vpop.f32.mrb[8].mxu0  ;;  %v925_v37 = vld [vmem:[#allocation2] sm:$0xff]  ;;  %v3239_v38 = vld [vmem:[#allocation2 + $0x18] sm:$0xff]  ;;  %v3248_v41 = vmul.f32 %v3223_v28, %v3232_v32 }
  0xf9   : > { %880 = vst.msk [vmem:[#allocation2 + $0x38] sm:$0xff] %vm872_vm3, %v843_v33  ;;  %v698_v42 = vadd.f32 %v2925_v36, %v3197_v59  ;;  %v689_v43 = vpop.f32.mrb[9].mxu0  ;;  %v957_v44 = vrot.slane %v925_v37, 7  ;;  %v1054_v45 = vrot.slane %v925_v37, 1  ;;  %v1225_v46 = vmul.f32 %v3223_v28, %v925_v37 }
  0xfa   : > { %878 = vst.msk [vmem:[#allocation2 + $0x28] sm:$0xff] %vm872_vm3, %v841_v35  ;;  %v690_v47 = vadd.f32 %v3197_v59, %v689_v43  ;;  %v2926_v48 = vpop.f32.mrb[10].mxu0  ;;  %v926_v49 = vld [vmem:[#allocation2 + $0x8] sm:$0xff]  ;;  %v1407_v50 = vrot.slane %v3239_v38, 7  ;;  %v1503_v51 = vrot.slane %v3239_v38, 1  ;;  %v3259_v52 = vmul.f32 %v3228_v29, %v3239_v38 }
  0xfb   : > { %v810_v53 = vmax.f32 %v698_v42, 0.0  ;;  %v701_v54 = vadd.f32 %v2926_v48, %v3197_v59  ;;  %v692_v55 = vpop.f32.mrb[11].mxu0  ;;  %v973_v56 = vrot.slane %v926_v49, 7  ;;  %v1070_v57 = vrot.slane %v926_v49, 1 }
  0xfc   : > { %v808_v58 = vmax.f32 %v690_v47, 0.0  ;;  %v693_v60 = vadd.f32 %v3197_v59, %v692_v55  ;;  %v1226_v61 = vmul.f32 %v3223_v28, %v926_v49  ;;  %v3266_v62 = vsel %vm989_vm4, %v1391_v34, %v1407_v50 }
  0xfd   : > { %v846_v63 = vmin.f32 %v810_v53, 6.0  ;;  %v811_v0 = vmax.f32 %v701_v54, 0.0  ;;  %v990_v1 = vsel %vm989_vm4, %v957_v44, %v973_v56  ;;  %v1006_v2 = vsel %vm989_vm4, %v973_v56, %v957_v44 }
  0xfe   : > { %v844_v3 = vmin.f32 %v808_v58, 6.0  ;;  %v809_v4 = vmax.f32 %v693_v60, 0.0  ;;  %v1022_v5 = vsel %vm921_vm6, 0.0, %v1006_v2  ;;  %v1087_v6 = vsel %vm1086_vm5, %v1054_v45, %v1070_v57 }
  0xff   : > { %883 = vst.msk [vmem:[#allocation2 + $0x50] sm:$0xff] %vm872_vm3, %v846_v63  ;;  %v847_v8 = vmin.f32 %v811_v0, 6.0  ;;  %v1103_v9 = vsel %vm1086_vm5, %v1070_v57, %v1054_v45  ;;  %v1156_v10 = vmul.f32 %v3279_v7, %v1022_v5  ;;  %v1157_v11 = vmul.f32 %v3279_v7, %v990_v1  ;;  %v3330_v47 = vld [vmem:[#allocation2 + $0x20] sm:$0xff] }
 0x100   : > { %881 = vst.msk [vmem:[#allocation2 + $0x40] sm:$0xff] %vm872_vm3, %v844_v3  ;;  %v845_v14 = vmin.f32 %v809_v4, 6.0  ;;  %v2929_v16 = vpop.f32.mrb[12].mxu0  ;;  %v1120_v17 = vsel %vm924_vm7, 0.0, %v1103_v9  ;;  %v1294_v18 = vmul.f32 %v3289_v13, %v1087_v6  ;;  %v1439_v19 = vsel %vm989_vm4, %v1407_v50, %v1391_v34  ;;  %v3320_v34 = vld [vmem:[%s4624_s5 + $0x5] ss:$0 sm:$0xff] }
 0x101   : > { %884 = vst.msk [vmem:[#allocation2 + $0x58] sm:$0xff] %vm872_vm3, %v847_v8  ;;  %v714_v20 = vadd.f32 %v2929_v16, %v3197_v59  ;;  %v705_v21 = vpop.f32.mrb[13].mxu0  ;;  %v1257_v22 = vadd.f32 %v1225_v46, %v1156_v10  ;;  %v1258_v24 = vadd.f32 %v1226_v61, %v1157_v11  ;;  %v1295_v25 = vmul.f32 %v3289_v13, %v1120_v17  ;;  %v3332_v48 = vld [vmem:[#allocation2 + $0x28] sm:$0xff]  ;;  %v3369_v17 = vld [vmem:[%s4624_s5 + $0x6] ss:$0 sm:$0xff] }
 0x102   : > { %882 = vst.msk [vmem:[#allocation2 + $0x48] sm:$0xff] %vm872_vm3, %v845_v14  ;;  %v706_v27 = vadd.f32 %v3197_v59, %v705_v21  ;;  %v2930_v30 = vpop.f32.mrb[14].mxu0  ;;  %v3309_v31 = vsel %vm921_vm6, 0.0, %v1439_v19  ;;  %v3313_v32 = vsel %vm1086_vm5, %v1487_v39, %v1503_v51  ;;  %v1535_v33 = vsel %vm1086_vm5, %v1503_v51, %v1487_v39 }
 0x103   : > { %v814_v35 = vmax.f32 %v714_v20, 0.0  ;;  %v717_v36 = vadd.f32 %v2930_v30, %v3197_v59  ;;  %v708_v37 = vpop.f32.mrb[15].mxu0  ;;  %v1326_v42 = vadd.f32 %v1294_v18, %v1257_v22  ;;  %v1327_v43 = vadd.f32 %v1295_v25, %v1258_v24  ;;  %v3374_v18 = vld [vmem:[%s4624_s5 + $0x7] ss:$0 sm:$0xff] }
 0x104   : > { %v812_v44 = vmax.f32 %v706_v27, 0.0  ;;  %v709_v45 = vadd.f32 %v3197_v59, %v708_v37  ;;  %v3326_v46 = vsel %vm924_vm7, 0.0, %v1535_v33  ;;  %v1588_v39 = vmul.f32 %v3303_v26, %v3309_v31 }
 0x105   : > { %v850_v49 = vmin.f32 %v814_v35, 6.0  ;;  %v815_v50 = vmax.f32 %v717_v36, 0.0  ;;  %v1589_v51 = vmul.f32 %v3303_v26, %v3266_v62  ;;  %v1726_v53 = vmul.f32 %v3320_v34, %v3313_v32  ;;  %v3389_v35 = vld [vmem:[%s4624_s5 + $0x8] ss:$0 sm:$0xff] }
 0x106   : > { %v848_v54 = vmin.f32 %v812_v44, 6.0  ;;  %v813_v55 = vmax.f32 %v709_v45, 0.0  ;;  %v1620_v56 = vadd.f32 %v1588_v39, %v1326_v42  ;;  %v1727_v57 = vmul.f32 %v3320_v34, %v3326_v46 }
 0x107   : > { %887 = vst.msk [vmem:[#allocation2 + $0x70] sm:$0xff] %vm872_vm3, %v850_v49  ;;  %v851_v58 = vmin.f32 %v815_v50, 6.0  ;;  %v1621_v60 = vadd.f32 %v1589_v51, %v1327_v43  ;;  %v1823_v61 = vrot.slane %v3330_v47, 7  ;;  %v1839_v63 = vrot.slane %v3332_v48, 7 }
 0x108   : > { %885 = vst.msk [vmem:[#allocation2 + $0x60] sm:$0xff] %vm872_vm3, %v848_v54  ;;  %v849_v0 = vmin.f32 %v813_v55, 6.0  ;;  %v2933_v1 = vpop.f32.mrb[16].mxu0  ;;  %v1689_v2 = vadd.f32 %v3244_v40, %v1620_v56  ;;  %v1919_v3 = vrot.slane %v3330_v47, 1  ;;  %v1935_v4 = vrot.slane %v3332_v48, 1 }
 0x109   : > { %888 = vst.msk [vmem:[#allocation2 + $0x78] sm:$0xff] %vm872_vm3, %v851_v58  ;;  %v730_v5 = vadd.f32 %v2933_v1, %v3197_v59  ;;  %v721_v6 = vpop.f32.mrb[17].mxu0  ;;  %v1690_v8 = vadd.f32 %v3259_v52, %v1621_v60  ;;  %v3352_v9 = vsel %vm989_vm4, %v1823_v61, %v1839_v63  ;;  %v1871_v10 = vsel %vm989_vm4, %v1839_v63, %v1823_v61  ;;  %v3412_v1 = vld [vmem:[%s4625_s6] ss:$0 sm:$0xff] }
 0x10a   : > { %886 = vst.msk [vmem:[#allocation2 + $0x68] sm:$0xff] %vm872_vm3, %v849_v0  ;;  %v722_v40 = vadd.f32 %v3197_v59, %v721_v6  ;;  %v2934_v11 = vpop.f32.mrb[18].mxu0  ;;  %v1758_v14 = vadd.f32 %v1726_v53, %v1689_v2  ;;  %v3360_v16 = vsel %vm921_vm6, 0.0, %v1871_v10  ;;  %v3364_v52 = vsel %vm1086_vm5, %v1919_v3, %v1935_v4 }
 0x10b   : > { %v818_v19 = vmax.f32 %v730_v5, 0.0  ;;  %v733_v20 = vadd.f32 %v2934_v11, %v3197_v59  ;;  %v724_v21 = vpop.f32.mrb[19].mxu0  ;;  %v1759_v22 = vadd.f32 %v1727_v57, %v1690_v8  ;;  %v1967_v24 = vsel %vm1086_vm5, %v1935_v4, %v1919_v3 }
 0x10c   : > { %v816_v25 = vmax.f32 %v722_v40, 0.0  ;;  %v725_v27 = vadd.f32 %v3197_v59, %v724_v21  ;;  %v3382_v30 = vsel %vm924_vm7, 0.0, %v1967_v24  ;;  %v2020_v33 = vmul.f32 %v3369_v17, %v3360_v16 }
 0x10d   : > { %v854_v36 = vmin.f32 %v818_v19, 6.0  ;;  %v819_v37 = vmax.f32 %v733_v20, 0.0  ;;  %v2021_v42 = vmul.f32 %v3369_v17, %v3352_v9  ;;  %v2089_v43 = vmul.f32 %v3374_v18, %v3330_v47 }
 0x10e   : > { %v852_v44 = vmin.f32 %v816_v25, 6.0  ;;  %v817_v45 = vmax.f32 %v725_v27, 0.0  ;;  %v2052_v39 = vadd.f32 %v2020_v33, %v1758_v14  ;;  %v2090_v49 = vmul.f32 %v3374_v18, %v3332_v48 }
 0x10f   : > { %891 = vst.msk [vmem:[#allocation2 + $0x90] sm:$0xff] %vm872_vm3, %v854_v36  ;;  %v855_v50 = vmin.f32 %v819_v37, 6.0  ;;  %v2053_v51 = vadd.f32 %v2021_v42, %v1759_v22  ;;  %v2158_v53 = vmul.f32 %v3389_v35, %v3364_v52  ;;  %v2159_v54 = vmul.f32 %v3389_v35, %v3382_v30 }
 0x110   : > { %889 = vst.msk [vmem:[#allocation2 + $0x80] sm:$0xff] %vm872_vm3, %v852_v44  ;;  %v853_v55 = vmin.f32 %v817_v45, 6.0  ;;  %v2937_v56 = vpop.f32.mrb[20].mxu0  ;;  %v2121_v57 = vadd.f32 %v2089_v43, %v2052_v39  ;;  %v1158_v58 = vmul.f32 %v3279_v7, %v3309_v31  ;;  %v1159_v60 = vmul.f32 %v3279_v7, %v3266_v62  ;;  %v3434_v44 = vld [vmem:[#allocation2 + $0x30] sm:$0xff] }
 0x111   : > { %892 = vst.msk [vmem:[#allocation2 + $0x98] sm:$0xff] %vm872_vm3, %v855_v50  ;;  %v746_v61 = vadd.f32 %v2937_v56, %v3197_v59  ;;  %v737_v63 = vpop.f32.mrb[21].mxu0  ;;  %v2122_v0 = vadd.f32 %v2090_v49, %v2053_v51  ;;  %v1228_v2 = vmul.f32 %v3223_v28, %v3239_v38  ;;  %v1296_v31 = vmul.f32 %v3289_v13, %v3313_v32 }
 0x112   : > { %890 = vst.msk [vmem:[#allocation2 + $0x88] sm:$0xff] %vm872_vm3, %v853_v55  ;;  %v738_v62 = vadd.f32 %v3197_v59, %v737_v63  ;;  %v2938_v3 = vpop.f32.mrb[22].mxu0  ;;  %v2190_v4 = vadd.f32 %v2158_v53, %v2121_v57  ;;  %v1259_v5 = vadd.f32 %v3248_v41, %v1158_v58  ;;  %v1297_v6 = vmul.f32 %v3289_v13, %v3326_v46  ;;  %v3443_v58 = vld [vmem:[#allocation2 + $0x38] sm:$0xff] }
 0x113   : > { %v822_v8 = vmax.f32 %v746_v61, 0.0  ;;  %v749_v10 = vadd.f32 %v2938_v3, %v3197_v59  ;;  %v740_v40 = vpop.f32.mrb[23].mxu0  ;;  %v2191_v11 = vadd.f32 %v2159_v54, %v2122_v0  ;;  %v1260_v38 = vadd.f32 %v1228_v2, %v1159_v60 }
 0x114   : > { %v820_v14 = vmax.f32 %v738_v62, 0.0  ;;  %v741_v32 = vadd.f32 %v3197_v59, %v740_v40  ;;  %v2229_v19 = vadd.f32 %v3412_v1, %v2190_v4  ;;  %v1328_v20 = vadd.f32 %v1296_v31, %v1259_v5 }
 0x115   : > { %v858_v21 = vmin.f32 %v822_v8, 6.0  ;;  %v823_v22 = vmax.f32 %v749_v10, 0.0  ;;  %v2230_v24 = vadd.f32 %v3412_v1, %v2191_v11  ;;  %v1329_v41 = vadd.f32 %v1297_v6, %v1260_v38 }
 0x116   : > { %v856_v25 = vmin.f32 %v820_v14, 6.0  ;;  %v821_v27 = vmax.f32 %v741_v32, 0.0  ;;  %v2261_v46 = vmax.f32 %v2229_v19, 0.0  ;;  %v1590_v33 = vmul.f32 %v3303_v26, %v3360_v16 }
 0x117   : > { %895 = vst.msk [vmem:[#allocation2 + $0xb0] sm:$0xff] %vm872_vm3, %v858_v21  ;;  %v859_v36 = vmin.f32 %v823_v22, 6.0  ;;  %v2262_v37 = vmax.f32 %v2230_v24, 0.0  ;;  %v1591_v42 = vmul.f32 %v3303_v26, %v3352_v9  ;;  %v1659_v43 = vmul.f32 %v3228_v29, %v3330_v47 }
 0x118   : > { %893 = vst.msk [vmem:[#allocation2 + $0xa0] sm:$0xff] %vm872_vm3, %v856_v25  ;;  %v857_v45 = vmin.f32 %v821_v27, 6.0  ;;  %v2941_v39 = vpop.f32.mrb[24].mxu0  ;;  %v2293_v49 = vmin.f32 %v2261_v46, 6.0  ;;  %v1622_v50 = vadd.f32 %v1590_v33, %v1328_v20  ;;  %v1660_v51 = vmul.f32 %v3228_v29, %v3332_v48 }
 0x119   : > { %896 = vst.msk [vmem:[#allocation2 + $0xb8] sm:$0xff] %vm872_vm3, %v859_v36  ;;  %v762_v53 = vadd.f32 %v2941_v39, %v3197_v59  ;;  %v753_v54 = vpop.f32.mrb[25].mxu0  ;;  %v2294_v55 = vmin.f32 %v2262_v37, 6.0  ;;  %v1623_v56 = vadd.f32 %v1591_v42, %v1329_v41  ;;  %v1728_v57 = vmul.f32 %v3320_v34, %v3364_v52 }
 0x11a   : > { %894 = vst.msk [vmem:[#allocation2 + $0xa8] sm:$0xff] %vm872_vm3, %v857_v45  ;;  %v754_v60 = vadd.f32 %v3197_v59, %v753_v54  ;;  %v2942_v61 = vpop.f32.mrb[26].mxu0  ;;  %v1691_v63 = vadd.f32 %v1659_v43, %v1622_v50  ;;  %v1729_v0 = vmul.f32 %v3320_v34, %v3382_v30  ;;  %v1824_v2 = vrot.slane %v3434_v44, 7 }
 0x11b   : > { %v826_v31 = vmax.f32 %v762_v53, 0.0  ;;  %v2325_v62 = vpack.c.bf16 %v2294_v55, %v2293_v49  ;;  %v765_v3 = vadd.f32 %v2942_v61, %v3197_v59  ;;  %v756_v4 = vpop.f32.mrb[27].mxu0  ;;  %v1692_v5 = vadd.f32 %v1660_v51, %v1623_v56 }
 0x11c   : > { %v824_v6 = vmax.f32 %v754_v60, 0.0  ;;  %v757_v8 = vadd.f32 %v3197_v59, %v756_v4  ;;  %v1760_v10 = vadd.f32 %v1728_v57, %v1691_v63  ;;  %v1840_v40 = vrot.slane %v3443_v58, 7 }
 0x11d   : > { %v862_v11 = vmin.f32 %v826_v31, 6.0  ;;  %2955 = vmatprep.mubr.msk.bf16.mxu1 %vm872_vm3, %v2325_v62  ;;  %v827_v38 = vmax.f32 %v765_v3, 0.0  ;;  %v1761_v14 = vadd.f32 %v1729_v0, %v1692_v5  ;;  %v1920_v32 = vrot.slane %v3434_v44, 1 }
 0x11e   : > { %v860_v19 = vmin.f32 %v824_v6, 6.0  ;;  %v825_v20 = vmax.f32 %v757_v8, 0.0  ;;  %v3457_v21 = vsel %vm989_vm4, %v1824_v2, %v1840_v40  ;;  %v1872_v22 = vsel %vm989_vm4, %v1840_v40, %v1824_v2  ;;  %v3513_v40 = vld [vmem:[#allocation2 + $0x40] sm:$0xff] }
 0x11f   : > { %899 = vst.msk [vmem:[#allocation2 + $0xd0] sm:$0xff] %vm872_vm3, %v862_v11  ;;  %v863_v24 = vmin.f32 %v827_v38, 6.0  ;;  %v3464_v41 = vsel %vm921_vm6, 0.0, %v1872_v22  ;;  %v1936_v25 = vrot.slane %v3443_v58, 1  ;;  %v2023_v27 = vmul.f32 %v3369_v17, %v3457_v21 }
 0x120   : > { %897 = vst.msk [vmem:[#allocation2 + $0xc0] sm:$0xff] %vm872_vm3, %v860_v19  ;;  %v861_v46 = vmin.f32 %v825_v20, 6.0  ;;  %v2022_v33 = vmul.f32 %v3369_v17, %v3464_v41  ;;  %v2091_v36 = vmul.f32 %v3374_v18, %v3434_v44  ;;  %v2092_v37 = vmul.f32 %v3374_v18, %v3443_v58  ;;  %v2945_v42 = vpop.f32.mrb[28].mxu0 }
 0x121   : > { %900 = vst.msk [vmem:[#allocation2 + $0xd8] sm:$0xff] %vm872_vm3, %v863_v24  ;;  %v3479_v43 = vsel %vm1086_vm5, %v1920_v32, %v1936_v25  ;;  %v1968_v45 = vsel %vm1086_vm5, %v1936_v25, %v1920_v32  ;;  %v2055_v39 = vadd.f32 %v2023_v27, %v1761_v14  ;;  %v778_v49 = vadd.f32 %v2945_v42, %v3197_v59  ;;  %v3484_v50 = vpop.f32.mrb[29].mxu0 }
 0x122   : > { %898 = vst.msk [vmem:[#allocation2 + $0xc8] sm:$0xff] %vm872_vm3, %v861_v46  ;;  %v3489_v51 = vsel %vm924_vm7, 0.0, %v1968_v45  ;;  %v2054_v53 = vadd.f32 %v2022_v33, %v1760_v10  ;;  %v2160_v54 = vmul.f32 %v3389_v35, %v3479_v43  ;;  %v1160_v55 = vmul.f32 %v3279_v7, %v3360_v16  ;;  %v3495_v56 = vpop.f32.mrb[30].mxu0 }
 0x123   : > { %v2124_v57 = vadd.f32 %v2092_v37, %v2055_v39  ;;  %v2161_v60 = vmul.f32 %v3389_v35, %v3489_v51  ;;  %v830_v61 = vmax.f32 %v778_v49, 0.0  ;;  %v1161_v63 = vmul.f32 %v3279_v7, %v3352_v9  ;;  %v772_v0 = vpop.f32.mrb[31].mxu0 }
 0x124   : > { %v2123_v2 = vadd.f32 %v2091_v36, %v2054_v53  ;;  %v1229_v31 = vmul.f32 %v3223_v28, %v3330_v47  ;;  %v1230_v62 = vmul.f32 %v3223_v28, %v3332_v48  ;;  %v1298_v16 = vmul.f32 %v3289_v13, %v3364_v52  ;;  %v3515_v48 = vld [vmem:[#allocation2 + $0x48] sm:$0xff] }
 0x125   : > { %v2193_v3 = vadd.f32 %v2161_v60, %v2124_v57  ;;  %v866_v4 = vmin.f32 %v830_v61, 6.0  ;;  %v1299_v5 = vmul.f32 %v3289_v13, %v3382_v30  ;;  %v1592_v6 = vmul.f32 %v3303_v26, %v3464_v41 }
 0x126   : > { %v2192_v9 = vadd.f32 %v2160_v54, %v2123_v2  ;;  %v1261_v8 = vadd.f32 %v1229_v31, %v1160_v55  ;;  %v1262_v10 = vadd.f32 %v1230_v62, %v1161_v63  ;;  %v1593_v47 = vmul.f32 %v3303_v26, %v3457_v21 }
 0x127   : > { %v2232_v52 = vadd.f32 %v3412_v1, %v2193_v3  ;;  %903 = vst.msk [vmem:[#allocation2 + $0xf0] sm:$0xff] %vm872_vm3, %v866_v4  ;;  %v1661_v30 = vmul.f32 %v3228_v29, %v3434_v44  ;;  %v1662_v11 = vmul.f32 %v3228_v29, %v3443_v58  ;;  %v1730_v38 = vmul.f32 %v3320_v34, %v3479_v43 }
 0x128   : > { %v2231_v14 = vadd.f32 %v3412_v1, %v2192_v9  ;;  %v1330_v32 = vadd.f32 %v1298_v16, %v1261_v8  ;;  %v1331_v19 = vadd.f32 %v1299_v5, %v1262_v10  ;;  %v1731_v20 = vmul.f32 %v3320_v34, %v3489_v51  ;;  %v3528_v22 = vpop.f32.mrb[32].mxu0 }
 0x129   : > { %v2264_v24 = vmax.f32 %v2232_v52, 0.0  ;;  %v1825_v25 = vrot.slane %v3513_v40, 7  ;;  %v1841_v27 = vrot.slane %v3515_v48, 7  ;;  %v1921_v46 = vrot.slane %v3513_v40, 1  ;;  %v3533_v33 = vpop.f32.mrb[33].mxu0 }
 0x12a   : > { %v2263_v36 = vmax.f32 %v2231_v14, 0.0  ;;  %v1624_v37 = vadd.f32 %v1592_v6, %v1330_v32  ;;  %v1625_v42 = vadd.f32 %v1593_v47, %v1331_v19  ;;  %v1937_v45 = vrot.slane %v3515_v48, 1  ;;  %v3536_v39 = vpop.f32.mrb[34].mxu0 }
 0x12b   : > { %v2296_v49 = vmin.f32 %v2264_v24, 6.0  ;;  %v3540_v53 = vsel %vm989_vm4, %v1825_v25, %v1841_v27  ;;  %v1873_v54 = vsel %vm989_vm4, %v1841_v27, %v1825_v25  ;;  %v2093_v55 = vmul.f32 %v3374_v18, %v3513_v40  ;;  %v3546_v57 = vpop.f32.mrb[35].mxu0 }
 0x12c   : > { %v2295_v60 = vmin.f32 %v2263_v36, 6.0  ;;  %v1693_v61 = vadd.f32 %v1661_v30, %v1624_v37  ;;  %v1694_v63 = vadd.f32 %v1662_v11, %v1625_v42  ;;  %v3550_v2 = vsel %vm921_vm6, 0.0, %v1873_v54 }
 0x12d   : > { %v3554_v31 = vsel %vm1086_vm5, %v1921_v46, %v1937_v45  ;;  %v1969_v62 = vsel %vm1086_vm5, %v1937_v45, %v1921_v46  ;;  %v2024_v16 = vmul.f32 %v3369_v17, %v3550_v2  ;;  %v2025_v3 = vmul.f32 %v3369_v17, %v3540_v53 }
 0x12e   : > { %v2326_v4 = vpack.c.bf16 %v2296_v49, %v2295_v60  ;;  %v1762_v5 = vadd.f32 %v1730_v38, %v1693_v61  ;;  %v1763_v6 = vadd.f32 %v1731_v20, %v1694_v63  ;;  %v3564_v9 = vsel %vm924_vm7, 0.0, %v1969_v62  ;;  %v3593_v60 = vld [vmem:[#allocation2 + $0x50] sm:$0xff]  ;;  %v3603_v63 = vld [vmem:[#allocation2 + $0x58] sm:$0xff] }
 0x12f   : > { %v2094_v8 = vmul.f32 %v3374_v18, %v3515_v48  ;;  %v2162_v10 = vmul.f32 %v3389_v35, %v3554_v31  ;;  %v2163_v47 = vmul.f32 %v3389_v35, %v3564_v9  ;;  %v770_v52 = vadd.f32 %v3197_v59, %v3484_v50 }
 0x130   : > { %2956 = vmatmul.mubr.msk.bf16.vlgmr.msra.gmra.mrb[0].mxu1 %vm872_vm3, %v2326_v4  ;;  %v2056_v30 = vadd.f32 %v2024_v16, %v1762_v5  ;;  %v2057_v11 = vadd.f32 %v2025_v3, %v1763_v6  ;;  %v781_v38 = vadd.f32 %v3495_v56, %v3197_v59  ;;  %v773_v14 = vadd.f32 %v3197_v59, %v772_v0 }
 0x131   : > { %v828_v32 = vmax.f32 %v770_v52, 0.0  ;;  %v1162_v19 = vmul.f32 %v3279_v7, %v3464_v41  ;;  %v1163_v20 = vmul.f32 %v3279_v7, %v3457_v21  ;;  %v1231_v24 = vmul.f32 %v3223_v28, %v3434_v44 }
 0x132   : > { %v2125_v50 = vadd.f32 %v2093_v55, %v2056_v30  ;;  %v2126_v25 = vadd.f32 %v2094_v8, %v2057_v11  ;;  %v831_v27 = vmax.f32 %v781_v38, 0.0  ;;  %v829_v46 = vmax.f32 %v773_v14, 0.0 }
 0x133   : > { %v864_v36 = vmin.f32 %v828_v32, 6.0  ;;  %v1232_v56 = vmul.f32 %v3223_v28, %v3443_v58  ;;  %v1263_v37 = vadd.f32 %v1231_v24, %v1162_v19  ;;  %v1300_v0 = vmul.f32 %v3289_v13, %v3479_v43 }
 0x134   : > { %v2194_v42 = vadd.f32 %v2162_v10, %v2125_v50  ;;  %v2195_v41 = vadd.f32 %v2163_v47, %v2126_v25  ;;  %v867_v45 = vmin.f32 %v831_v27, 6.0  ;;  %v865_v49 = vmin.f32 %v829_v46, 6.0 }
 0x135   : > { %901 = vst.msk [vmem:[#allocation2 + $0xe0] sm:$0xff] %vm872_vm3, %v864_v36  ;;  %v1264_v21 = vadd.f32 %v1232_v56, %v1163_v20  ;;  %v1301_v44 = vmul.f32 %v3289_v13, %v3489_v51  ;;  %v1332_v54 = vadd.f32 %v1300_v0, %v1263_v37  ;;  %v1594_v55 = vmul.f32 %v3303_v26, %v3550_v2 }
 0x136   : > { %v2233_v58 = vadd.f32 %v3412_v1, %v2194_v42  ;;  %v2234_v43 = vadd.f32 %v3412_v1, %v2195_v41  ;;  %904 = vst.msk [vmem:[#allocation2 + $0xf8] sm:$0xff] %vm872_vm3, %v867_v45  ;;  %902 = vst.msk [vmem:[#allocation2 + $0xe8] sm:$0xff] %vm872_vm3, %v865_v49  ;;  %v1595_v61 = vmul.f32 %v3303_v26, %v3540_v53  ;;  %v1826_v10 = vrot.slane %v3593_v60, 7 }
 0x137   : > { %v1663_v51 = vmul.f32 %v3228_v29, %v3513_v40  ;;  %v1333_v62 = vadd.f32 %v1301_v44, %v1264_v21  ;;  %v1626_v16 = vadd.f32 %v1594_v55, %v1332_v54  ;;  %v1664_v3 = vmul.f32 %v3228_v29, %v3515_v48 }
 0x138   : > { %v1732_v4 = vmul.f32 %v3320_v34, %v3554_v31  ;;  %v2265_v5 = vmax.f32 %v2233_v58, 0.0  ;;  %v2266_v6 = vmax.f32 %v2234_v43, 0.0  ;;  %v1733_v8 = vmul.f32 %v3320_v34, %v3564_v9 }
 0x139   : > { %v1627_v47 = vadd.f32 %v1595_v61, %v1333_v62  ;;  %v1695_v52 = vadd.f32 %v1663_v51, %v1626_v16  ;;  %v1842_v30 = vrot.slane %v3603_v63, 7  ;;  %v1922_v11 = vrot.slane %v3593_v60, 1 }
 0x13a   : > { %v2297_v38 = vmin.f32 %v2265_v5, 6.0  ;;  %v2298_v14 = vmin.f32 %v2266_v6, 6.0  ;;  %v1938_v32 = vrot.slane %v3603_v63, 1  ;;  %v2095_v19 = vmul.f32 %v3374_v18, %v3593_v60 }
 0x13b   : > { %v1696_v20 = vadd.f32 %v1664_v3, %v1627_v47  ;;  %v1764_v24 = vadd.f32 %v1732_v4, %v1695_v52  ;;  %v3619_v50 = vsel %vm989_vm4, %v1826_v10, %v1842_v30  ;;  %v1874_v25 = vsel %vm989_vm4, %v1842_v30, %v1826_v10 }
 0x13c   : > { %v2327_v27 = vpack.c.bf16 %v2298_v14, %v2297_v38  ;;  %v3625_v46 = vsel %vm921_vm6, 0.0, %v1874_v25  ;;  %v3629_v36 = vsel %vm1086_vm5, %v1922_v11, %v1938_v32  ;;  %v1970_v56 = vsel %vm1086_vm5, %v1938_v32, %v1922_v11 }
 0x13d   : > { %v1765_v37 = vadd.f32 %v1733_v8, %v1696_v20  ;;  %v3635_v0 = vsel %vm924_vm7, 0.0, %v1970_v56  ;;  %v2026_v42 = vmul.f32 %v3369_v17, %v3625_v46  ;;  %v2027_v41 = vmul.f32 %v3369_v17, %v3619_v50  ;;  %v3666_v8 = vld [vmem:[#allocation2 + $0x60] sm:$0xff] }
 0x13e   : > { %2959 = vmatprep.mubr.msk.bf16.mxu1 %vm872_vm3, %v2327_v27  ;;  %v2096_v45 = vmul.f32 %v3374_v18, %v3603_v63  ;;  %v2164_v49 = vmul.f32 %v3389_v35, %v3629_v36  ;;  %v2165_v21 = vmul.f32 %v3389_v35, %v3635_v0  ;;  %v794_v44 = vadd.f32 %v3528_v22, %v3197_v59 }
 0x13f   : > { %v2058_v54 = vadd.f32 %v2026_v42, %v1764_v24  ;;  %v2059_v55 = vadd.f32 %v2027_v41, %v1765_v37  ;;  %v1164_v58 = vmul.f32 %v3279_v7, %v3550_v2  ;;  %v1165_v43 = vmul.f32 %v3279_v7, %v3540_v53 }
 0x140   : > { %v834_v61 = vmax.f32 %v794_v44, 0.0  ;;  %v1233_v51 = vmul.f32 %v3223_v28, %v3513_v40  ;;  %v1234_v62 = vmul.f32 %v3223_v28, %v3515_v48  ;;  %v1302_v16 = vmul.f32 %v3289_v13, %v3554_v31  ;;  %v3668_v48 = vld [vmem:[#allocation2 + $0x68] sm:$0xff] }
 0x141   : > { %v2127_v3 = vadd.f32 %v2095_v19, %v2058_v54  ;;  %v2128_v22 = vadd.f32 %v2096_v45, %v2059_v55  ;;  %v1303_v4 = vmul.f32 %v3289_v13, %v3564_v9  ;;  %v1596_v2 = vmul.f32 %v3303_v26, %v3625_v46 }
 0x142   : > { %v870_v5 = vmin.f32 %v834_v61, 6.0  ;;  %v1265_v53 = vadd.f32 %v1233_v51, %v1164_v58  ;;  %v1266_v6 = vadd.f32 %v1234_v62, %v1165_v43  ;;  %v1597_v40 = vmul.f32 %v3303_v26, %v3619_v50 }
 0x143   : > { %v2196_v10 = vadd.f32 %v2164_v49, %v2127_v3  ;;  %v2197_v31 = vadd.f32 %v2165_v21, %v2128_v22  ;;  %v1665_v47 = vmul.f32 %v3228_v29, %v3593_v60  ;;  %v1666_v9 = vmul.f32 %v3228_v29, %v3603_v63 }
 0x144   : > { %907 = vst.msk [vmem:[#allocation2 + $0x110] sm:$0xff] %vm872_vm3, %v870_v5  ;;  %v1334_v52 = vadd.f32 %v1302_v16, %v1265_v53  ;;  %v1335_v30 = vadd.f32 %v1303_v4, %v1266_v6  ;;  %v1734_v11 = vmul.f32 %v3320_v34, %v3629_v36  ;;  %v1735_v38 = vmul.f32 %v3320_v34, %v3635_v0 }
 0x145   : > { %v2235_v14 = vadd.f32 %v3412_v1, %v2196_v10  ;;  %v2236_v32 = vadd.f32 %v3412_v1, %v2197_v31  ;;  %916 = vst.msk [vmem:[#allocation2 + $0x110] sm:$0xff] %vm872_vm3, %v3050_v15  ;;  %v1827_v19 = vrot.slane %v3666_v8, 7  ;;  %v1843_v20 = vrot.slane %v3668_v48, 7 }
 0x146   : > { %v1628_v24 = vadd.f32 %v1596_v2, %v1334_v52  ;;  %v1629_v25 = vadd.f32 %v1597_v40, %v1335_v30  ;;  %v1923_v27 = vrot.slane %v3666_v8, 1  ;;  %v1939_v56 = vrot.slane %v3668_v48, 1 }
 0x147   : > { %v2267_v37 = vmax.f32 %v2235_v14, 0.0  ;;  %v2268_v42 = vmax.f32 %v2236_v32, 0.0  ;;  %v3689_v41 = vsel %vm989_vm4, %v1827_v19, %v1843_v20  ;;  %v1875_v45 = vsel %vm989_vm4, %v1843_v20, %v1827_v19 }
 0x148   : > { %v1697_v49 = vadd.f32 %v1665_v47, %v1628_v24  ;;  %v1698_v21 = vadd.f32 %v1666_v9, %v1629_v25  ;;  %v3695_v44 = vsel %vm921_vm6, 0.0, %v1875_v45  ;;  %v3699_v54 = vsel %vm1086_vm5, %v1923_v27, %v1939_v56 }
 0x149   : > { %v2299_v55 = vmin.f32 %v2267_v37, 6.0  ;;  %v2300_v58 = vmin.f32 %v2268_v42, 6.0  ;;  %v1971_v43 = vsel %vm1086_vm5, %v1939_v56, %v1923_v27  ;;  %v2028_v61 = vmul.f32 %v3369_v17, %v3695_v44  ;;  %v3743_v37 = vld [vmem:[#allocation2 + $0x70] sm:$0xff]  ;;  %v3745_v42 = vld [vmem:[#allocation2 + $0x78] sm:$0xff] }
 0x14a   : > { %v1766_v51 = vadd.f32 %v1734_v11, %v1697_v49  ;;  %v1767_v62 = vadd.f32 %v1735_v38, %v1698_v21  ;;  %v3707_v16 = vsel %vm924_vm7, 0.0, %v1971_v43  ;;  %v2029_v3 = vmul.f32 %v3369_v17, %v3689_v41 }
 0x14b   : > { %v2328_v22 = vpack.c.bf16 %v2300_v58, %v2299_v55  ;;  %v2097_v4 = vmul.f32 %v3374_v18, %v3666_v8  ;;  %v2098_v2 = vmul.f32 %v3374_v18, %v3668_v48  ;;  %v2166_v5 = vmul.f32 %v3389_v35, %v3699_v54 }
 0x14c   : > { %v2060_v53 = vadd.f32 %v2028_v61, %v1766_v51  ;;  %v2061_v6 = vadd.f32 %v2029_v3, %v1767_v62  ;;  %v2167_v40 = vmul.f32 %v3389_v35, %v3707_v16  ;;  %v786_v10 = vadd.f32 %v3197_v59, %v3533_v33 }
 0x14d   : > { %2960 = vmatmul.mubr.msk.bf16.gmra.mrb[4].mxu1 %vm872_vm3, %v2328_v22  ;;  %v797_v31 = vadd.f32 %v3536_v39, %v3197_v59  ;;  %v789_v47 = vadd.f32 %v3197_v59, %v3546_v57  ;;  %v1166_v9 = vmul.f32 %v3279_v7, %v3625_v46  ;;  %v1167_v52 = vmul.f32 %v3279_v7, %v3619_v50 }
 0x14e   : > { %v2129_v30 = vadd.f32 %v2097_v4, %v2060_v53  ;;  %v2130_v11 = vadd.f32 %v2098_v2, %v2061_v6  ;;  %v832_v38 = vmax.f32 %v786_v10, 0.0  ;;  %v1235_v33 = vmul.f32 %v3223_v28, %v3593_v60 }
 0x14f   : > { %v835_v14 = vmax.f32 %v797_v31, 0.0  ;;  %v833_v32 = vmax.f32 %v789_v47, 0.0  ;;  %v1236_v39 = vmul.f32 %v3223_v28, %v3603_v63  ;;  %v1304_v59 = vmul.f32 %v3289_v13, %v3629_v36 }
 0x150   : > { %v2198_v57 = vadd.f32 %v2166_v5, %v2129_v30  ;;  %v2199_v19 = vadd.f32 %v2167_v40, %v2130_v11  ;;  %v868_v46 = vmin.f32 %v832_v38, 6.0  ;;  %v1267_v20 = vadd.f32 %v1235_v33, %v1166_v9 }
 0x151   : > { %v871_v24 = vmin.f32 %v835_v14, 6.0  ;;  %v869_v50 = vmin.f32 %v833_v32, 6.0  ;;  %v1268_v25 = vadd.f32 %v1236_v39, %v1167_v52  ;;  %v1305_v27 = vmul.f32 %v3289_v13, %v3635_v0 }
 0x152   : > { %v2237_v60 = vadd.f32 %v3412_v1, %v2198_v57  ;;  %v2238_v56 = vadd.f32 %v3412_v1, %v2199_v19  ;;  %905 = vst.msk [vmem:[#allocation2 + $0x100] sm:$0xff] %vm872_vm3, %v868_v46  ;;  %v1336_v63 = vadd.f32 %v1304_v59, %v1267_v20  ;;  %v1598_v36 = vmul.f32 %v3303_v26, %v3695_v44 }
 0x153   : > { %908 = vst.msk [vmem:[#allocation2 + $0x118] sm:$0xff] %vm872_vm3, %v871_v24  ;;  %906 = vst.msk [vmem:[#allocation2 + $0x108] sm:$0xff] %vm872_vm3, %v869_v50  ;;  %v1337_v45 = vadd.f32 %v1305_v27, %v1268_v25  ;;  %v1599_v0 = vmul.f32 %v3303_v26, %v3689_v41  ;;  %v1667_v49 = vmul.f32 %v3228_v29, %v3666_v8  ;;  %v1828_v3 = vrot.slane %v3743_v37, 7 }
 0x154   : > { %v1668_v21 = vmul.f32 %v3228_v29, %v3668_v48  ;;  %v2269_v55 = vmax.f32 %v2237_v60, 0.0  ;;  %v2270_v58 = vmax.f32 %v2238_v56, 0.0  ;;  %917 = vst.msk [vmem:[#allocation2 + $0x118] sm:$0xff] %vm872_vm3, %v3050_v15  ;;  %v1630_v43 = vadd.f32 %v1598_v36, %v1336_v63  ;;  %v3812_v63 = vld [vmem:[#allocation2 + $0x80] sm:$0xff] }
 0x155   : > { %v1736_v61 = vmul.f32 %v3320_v34, %v3699_v54  ;;  %v1631_v51 = vadd.f32 %v1599_v0, %v1337_v45  ;;  %v1737_v62 = vmul.f32 %v3320_v34, %v3707_v16  ;;  %v1844_v22 = vrot.slane %v3745_v42, 7 }
 0x156   : > { %v2301_v4 = vmin.f32 %v2269_v55, 6.0  ;;  %v2302_v2 = vmin.f32 %v2270_v58, 6.0  ;;  %v1699_v29 = vadd.f32 %v1667_v49, %v1630_v43  ;;  %v1924_v5 = vrot.slane %v3743_v37, 1 }
 0x157   : > { %v1700_v53 = vadd.f32 %v1668_v21, %v1631_v51  ;;  %v3766_v15 = vsel %vm989_vm4, %v1828_v3, %v1844_v22  ;;  %v1876_v6 = vsel %vm989_vm4, %v1844_v22, %v1828_v3  ;;  %v1940_v40 = vrot.slane %v3745_v42, 1 }
 0x158   : > { %v2329_v10 = vpack.c.bf16 %v2302_v2, %v2301_v4  ;;  %v1768_v31 = vadd.f32 %v1736_v61, %v1699_v29  ;;  %v3773_v47 = vsel %vm921_vm6, 0.0, %v1876_v6  ;;  %v2031_v9 = vmul.f32 %v3369_v17, %v3766_v15 }
 0x159   : > { %v1769_v52 = vadd.f32 %v1737_v62, %v1700_v53  ;;  %v3779_v30 = vsel %vm1086_vm5, %v1924_v5, %v1940_v40  ;;  %v1972_v11 = vsel %vm1086_vm5, %v1940_v40, %v1924_v5  ;;  %v2030_v38 = vmul.f32 %v3369_v17, %v3773_v47 }
 0x15a   : > { %2963 = vmatprep.mubr.msk.bf16.mxu1 %vm872_vm3, %v2329_v10  ;;  %v3788_v33 = vsel %vm924_vm7, 0.0, %v1972_v11  ;;  %v2099_v14 = vmul.f32 %v3374_v18, %v3743_v37  ;;  %v2100_v32 = vmul.f32 %v3374_v18, %v3745_v42  ;;  %v2168_v39 = vmul.f32 %v3389_v35, %v3779_v30 }
 0x15b   : > { %v2062_v59 = vadd.f32 %v2030_v38, %v1768_v31  ;;  %v2063_v57 = vadd.f32 %v2031_v9, %v1769_v52  ;;  %v2169_v19 = vmul.f32 %v3389_v35, %v3788_v33  ;;  %v1168_v46 = vmul.f32 %v3279_v7, %v3695_v44 }
 0x15c   : > { %v1169_v20 = vmul.f32 %v3279_v7, %v3689_v41  ;;  %v1237_v24 = vmul.f32 %v3223_v28, %v3666_v8  ;;  %v1238_v50 = vmul.f32 %v3223_v28, %v3668_v48  ;;  %v1306_v25 = vmul.f32 %v3289_v13, %v3699_v54  ;;  %v3819_v28 = vld [vmem:[%s4624_s5 + $0x4] ss:$0 sm:$0xff]  ;;  %v3823_v54 = vld [vmem:[#allocation2 + $0x88] sm:$0xff] }
 0x15d   : > { %v2131_v27 = vadd.f32 %v2099_v14, %v2062_v59  ;;  %v2132_v60 = vadd.f32 %v2100_v32, %v2063_v57  ;;  %v1307_v56 = vmul.f32 %v3289_v13, %v3707_v16  ;;  %v1600_v44 = vmul.f32 %v3303_v26, %v3773_v47 }
 0x15e   : > { %v1269_v41 = vadd.f32 %v1237_v24, %v1168_v46  ;;  %v1270_v36 = vadd.f32 %v1238_v50, %v1169_v20  ;;  %v1601_v8 = vmul.f32 %v3303_v26, %v3766_v15  ;;  %v1669_v48 = vmul.f32 %v3819_v28, %v3743_v37 }
 0x15f   : > { %v2200_v16 = vadd.f32 %v2168_v39, %v2131_v27  ;;  %v2201_v45 = vadd.f32 %v2169_v19, %v2132_v60  ;;  %v1670_v0 = vmul.f32 %v3819_v28, %v3745_v42  ;;  %v1738_v49 = vmul.f32 %v3320_v34, %v3779_v30 }
 0x160   : > { %v1338_v21 = vadd.f32 %v1306_v25, %v1269_v41  ;;  %v1339_v55 = vadd.f32 %v1307_v56, %v1270_v36  ;;  %v1739_v58 = vmul.f32 %v3320_v34, %v3788_v33  ;;  %v1829_v43 = vrot.slane %v3812_v63, 7 }
 0x161   : > { %v2239_v61 = vadd.f32 %v3412_v1, %v2200_v16  ;;  %v2240_v51 = vadd.f32 %v3412_v1, %v2201_v45  ;;  %v1845_v62 = vrot.slane %v3823_v54, 7  ;;  %v1925_v3 = vrot.slane %v3812_v63, 1  ;;  %v3891_v45 = vld [vmem:[#allocation2 + $0x90] sm:$0xff] }
 0x162   : > { %v1632_v22 = vadd.f32 %v1600_v44, %v1338_v21  ;;  %v1633_v4 = vadd.f32 %v1601_v8, %v1339_v55  ;;  %v1941_v2 = vrot.slane %v3823_v54, 1  ;;  %v2101_v29 = vmul.f32 %v3374_v18, %v3812_v63  ;;  %v3877_v44 = vld [vmem:[%s4624_s5 + $0x1] ss:$0 sm:$0xff] }
 0x163   : > { %v2271_v5 = vmax.f32 %v2239_v61, 0.0  ;;  %v2272_v53 = vmax.f32 %v2240_v51, 0.0  ;;  %v3841_v6 = vsel %vm989_vm4, %v1829_v43, %v1845_v62  ;;  %v1877_v40 = vsel %vm989_vm4, %v1845_v62, %v1829_v43 }
 0x164   : > { %v1701_v10 = vadd.f32 %v1669_v48, %v1632_v22  ;;  %v1702_v31 = vadd.f32 %v1670_v0, %v1633_v4  ;;  %v3847_v9 = vsel %vm921_vm6, 0.0, %v1877_v40  ;;  %v3851_v52 = vsel %vm1086_vm5, %v1925_v3, %v1941_v2 }
 0x165   : > { %v2303_v11 = vmin.f32 %v2271_v5, 6.0  ;;  %v2304_v38 = vmin.f32 %v2272_v53, 6.0  ;;  %v1973_v14 = vsel %vm1086_vm5, %v1941_v2, %v1925_v3  ;;  %v2032_v32 = vmul.f32 %v3369_v17, %v3847_v9 }
 0x166   : > { %v1770_v39 = vadd.f32 %v1738_v49, %v1701_v10  ;;  %v1771_v59 = vadd.f32 %v1739_v58, %v1702_v31  ;;  %v3859_v57 = vsel %vm924_vm7, 0.0, %v1973_v14  ;;  %v2033_v19 = vmul.f32 %v3369_v17, %v3841_v6 }
 0x167   : > { %v2330_v46 = vpack.c.bf16 %v2304_v38, %v2303_v11  ;;  %v2102_v20 = vmul.f32 %v3374_v18, %v3823_v54  ;;  %v2170_v24 = vmul.f32 %v3389_v35, %v3851_v52  ;;  %v2171_v50 = vmul.f32 %v3389_v35, %v3859_v57 }
 0x168   : > { %v2064_v25 = vadd.f32 %v2032_v32, %v1770_v39  ;;  %v2065_v27 = vadd.f32 %v2033_v19, %v1771_v59  ;;  %v1170_v60 = vmul.f32 %v3279_v7, %v3773_v47  ;;  %v1171_v56 = vmul.f32 %v3279_v7, %v3766_v15 }
 0x169   : > { %2964 = vmatmul.mubr.msk.bf16.gmra.mrb[8].mxu1 %vm872_vm3, %v2330_v46  ;;  %v1239_v41 = vmul.f32 %v3877_v44, %v3743_v37  ;;  %v1240_v36 = vmul.f32 %v3877_v44, %v3745_v42  ;;  %v1308_v8 = vmul.f32 %v3289_v13, %v3779_v30  ;;  %v1309_v47 = vmul.f32 %v3289_v13, %v3788_v33  ;;  %v3893_v37 = vld [vmem:[#allocation2 + $0x98] sm:$0xff] }
 0x16a   : > { %v2133_v7 = vadd.f32 %v2101_v29, %v2064_v25  ;;  %v2134_v15 = vadd.f32 %v2102_v20, %v2065_v27  ;;  %v1602_v48 = vmul.f32 %v3303_v26, %v3847_v9  ;;  %v1603_v16 = vmul.f32 %v3303_v26, %v3841_v6 }
 0x16b   : > { %v1271_v0 = vadd.f32 %v1239_v41, %v1170_v60  ;;  %v1272_v42 = vadd.f32 %v1240_v36, %v1171_v56  ;;  %v1671_v30 = vmul.f32 %v3819_v28, %v3812_v63  ;;  %v1672_v13 = vmul.f32 %v3819_v28, %v3823_v54  ;;  %v3944_v56 = vld [vmem:[%s4624_s5] ss:$0 sm:$0xff] }
 0x16c   : > { %v2202_v33 = vadd.f32 %v2170_v24, %v2133_v7  ;;  %v2203_v49 = vadd.f32 %v2171_v50, %v2134_v15  ;;  %v1740_v21 = vmul.f32 %v3320_v34, %v3851_v52  ;;  %v1741_v26 = vmul.f32 %v3320_v34, %v3859_v57 }
 0x16d   : > { %v1340_v55 = vadd.f32 %v1308_v8, %v1271_v0  ;;  %v1341_v58 = vadd.f32 %v1309_v47, %v1272_v42  ;;  %v1830_v43 = vrot.slane %v3891_v45, 7  ;;  %v1846_v61 = vrot.slane %v3893_v37, 7  ;;  %v3958_v47 = vld [vmem:[%s4624_s5 + $0x2] ss:$0 sm:$0xff] }
 0x16e   : > { %v2241_v51 = vadd.f32 %v3412_v1, %v2202_v33  ;;  %v2242_v62 = vadd.f32 %v3412_v1, %v2203_v49  ;;  %v1926_v3 = vrot.slane %v3891_v45, 1  ;;  %v1942_v22 = vrot.slane %v3893_v37, 1  ;;  %v3973_v0 = vld [vmem:[#allocation2 + $0xa0] sm:$0xff] }
 0x16f   : > { %v1634_v4 = vadd.f32 %v1602_v48, %v1340_v55  ;;  %v1635_v2 = vadd.f32 %v1603_v16, %v1341_v58  ;;  %v3911_v29 = vsel %vm989_vm4, %v1830_v43, %v1846_v61  ;;  %v1878_v34 = vsel %vm989_vm4, %v1846_v61, %v1830_v43 }
 0x170   : > { %v2273_v5 = vmax.f32 %v2241_v51, 0.0  ;;  %v2274_v53 = vmax.f32 %v2242_v62, 0.0  ;;  %v3917_v40 = vsel %vm921_vm6, 0.0, %v1878_v34  ;;  %v3921_v10 = vsel %vm1086_vm5, %v1926_v3, %v1942_v22 }
 0x171   : > { %v1703_v31 = vadd.f32 %v1671_v30, %v1634_v4  ;;  %v1704_v11 = vadd.f32 %v1672_v13, %v1635_v2  ;;  %v1974_v38 = vsel %vm1086_vm5, %v1942_v22, %v1926_v3  ;;  %v2034_v14 = vmul.f32 %v3369_v17, %v3917_v40  ;;  %v3984_v13 = vld [vmem:[%s4624_s5 + $0x5] ss:$0 sm:$0xff] }
 0x172   : > { %v2305_v32 = vmin.f32 %v2273_v5, 6.0  ;;  %v2306_v39 = vmin.f32 %v2274_v53, 6.0  ;;  %v3929_v59 = vsel %vm924_vm7, 0.0, %v1974_v38  ;;  %v2035_v19 = vmul.f32 %v3369_v17, %v3911_v29  ;;  %v4005_v53 = vld [vmem:[%s4624_s5 + $0x7] ss:$0 sm:$0xff] }
 0x173   : > { %v1772_v46 = vadd.f32 %v1740_v21, %v1703_v31  ;;  %v1773_v20 = vadd.f32 %v1741_v26, %v1704_v11  ;;  %v2103_v24 = vmul.f32 %v3374_v18, %v3891_v45  ;;  %v2104_v50 = vmul.f32 %v3374_v18, %v3893_v37 }
 0x174   : > { %v2331_v25 = vpack.c.bf16 %v2306_v39, %v2305_v32  ;;  %v2172_v27 = vmul.f32 %v3389_v35, %v3921_v10  ;;  %v2173_v60 = vmul.f32 %v3389_v35, %v3929_v59  ;;  %v1172_v17 = vmul.f32 %v3944_v56, %v3847_v9 }
 0x175   : > { %v2066_v41 = vadd.f32 %v2034_v14, %v1772_v46  ;;  %v2067_v36 = vadd.f32 %v2035_v19, %v1773_v20  ;;  %v1173_v18 = vmul.f32 %v3944_v56, %v3841_v6  ;;  %v1241_v8 = vmul.f32 %v3877_v44, %v3812_v63  ;;  %v3967_v63 = vld [vmem:[%s4624_s5 + $0x3] ss:$0 sm:$0xff]  ;;  %v4022_v46 = vld [vmem:[%s4624_s5 + $0x6] ss:$0 sm:$0xff] }
 0x176   : > { %2967 = vmatprep.mubr.msk.bf16.mxu1 %vm872_vm3, %v2331_v25  ;;  %v1242_v35 = vmul.f32 %v3877_v44, %v3823_v54  ;;  %v1310_v9 = vmul.f32 %v3958_v47, %v3851_v52  ;;  %v1311_v7 = vmul.f32 %v3958_v47, %v3859_v57  ;;  %v1604_v6 = vmul.f32 %v3967_v63, %v3917_v40  ;;  %v3975_v52 = vld [vmem:[#allocation2 + $0xa8] sm:$0xff] }
 0x177   : > { %v2135_v54 = vadd.f32 %v2103_v24, %v2066_v41  ;;  %v2136_v15 = vadd.f32 %v2104_v50, %v2067_v36  ;;  %v1273_v48 = vadd.f32 %v1241_v8, %v1172_v17  ;;  %v1605_v16 = vmul.f32 %v3967_v63, %v3911_v29  ;;  %v4037_v36 = vld [vmem:[%s4624_s5 + $0x8] ss:$0 sm:$0xff] }
 0x178   : > { %v1274_v42 = vadd.f32 %v1242_v35, %v1173_v18  ;;  %v1673_v57 = vmul.f32 %v3819_v28, %v3891_v45  ;;  %v1674_v30 = vmul.f32 %v3819_v28, %v3893_v37  ;;  %v1742_v33 = vmul.f32 %v3984_v13, %v3921_v10 }
 0x179   : > { %v2204_v49 = vadd.f32 %v2172_v27, %v2135_v54  ;;  %v2205_v21 = vadd.f32 %v2173_v60, %v2136_v15  ;;  %v1342_v26 = vadd.f32 %v1310_v9, %v1273_v48  ;;  %v1743_v55 = vmul.f32 %v3984_v13, %v3929_v59 }
 0x17a   : > { %v1343_v58 = vadd.f32 %v1311_v7, %v1274_v42  ;;  %v1831_v43 = vrot.slane %v3973_v0, 7  ;;  %v1847_v61 = vrot.slane %v3975_v52, 7  ;;  %v1927_v51 = vrot.slane %v3973_v0, 1 }
 0x17b   : > { %v2243_v62 = vadd.f32 %v3412_v1, %v2204_v49  ;;  %v2244_v3 = vadd.f32 %v3412_v1, %v2205_v21  ;;  %v1636_v22 = vadd.f32 %v1604_v6, %v1342_v26  ;;  %v1943_v4 = vrot.slane %v3975_v52, 1  ;;  %v4060_v49 = vld [vmem:[#allocation2 + $0xb0] sm:$0xff] }
 0x17c   : > { %v1637_v2 = vadd.f32 %v1605_v16, %v1343_v58  ;;  %v3998_v34 = vsel %vm989_vm4, %v1831_v43, %v1847_v61  ;;  %v1879_v5 = vsel %vm989_vm4, %v1847_v61, %v1831_v43  ;;  %v2105_v31 = vmul.f32 %v4005_v53, %v3973_v0 }
 0x17d   : > { %v2275_v1 = vmax.f32 %v2243_v62, 0.0  ;;  %v2276_v11 = vmax.f32 %v2244_v3, 0.0  ;;  %v1705_v38 = vadd.f32 %v1673_v57, %v1636_v22  ;;  %v4011_v14 = vsel %vm921_vm6, 0.0, %v1879_v5 }
 0x17e   : > { %v1706_v32 = vadd.f32 %v1674_v30, %v1637_v2  ;;  %v4015_v39 = vsel %vm1086_vm5, %v1927_v51, %v1943_v4  ;;  %v1975_v19 = vsel %vm1086_vm5, %v1943_v4, %v1927_v51  ;;  %v2036_v20 = vmul.f32 %v4022_v46, %v4011_v14  ;;  %v4075_v51 = vld [vmem:[%s4625_s6] ss:$0 sm:$0xff] }
 0x17f   : > { %v2307_v24 = vmin.f32 %v2275_v1, 6.0  ;;  %v2308_v50 = vmin.f32 %v2276_v11, 6.0  ;;  %v1774_v25 = vadd.f32 %v1742_v33, %v1705_v38  ;;  %v4028_v27 = vsel %vm924_vm7, 0.0, %v1975_v19 }
 0x180   : > { %v1775_v60 = vadd.f32 %v1743_v55, %v1706_v32  ;;  %v2037_v17 = vmul.f32 %v4022_v46, %v3998_v34  ;;  %v2106_v41 = vmul.f32 %v4005_v53, %v3975_v52  ;;  %v2174_v18 = vmul.f32 %v4037_v36, %v4015_v39 }
 0x181   : > { %v2332_v8 = vpack.c.bf16 %v2308_v50, %v2307_v24  ;;  %v2068_v35 = vadd.f32 %v2036_v20, %v1774_v25  ;;  %v2175_v9 = vmul.f32 %v4037_v36, %v4028_v27  ;;  %v1174_v7 = vmul.f32 %v3944_v56, %v3917_v40 }
 0x182   : > { %v2069_v6 = vadd.f32 %v2037_v17, %v1775_v60  ;;  %v1175_v54 = vmul.f32 %v3944_v56, %v3911_v29  ;;  %v1243_v15 = vmul.f32 %v3877_v44, %v3891_v45  ;;  %v1244_v48 = vmul.f32 %v3877_v44, %v3893_v37  ;;  %v4062_v37 = vld [vmem:[#allocation2 + $0xb8] sm:$0xff] }
 0x183   : > { %2968 = vmatmul.mubr.msk.bf16.gmra.mrb[12].mxu1 %vm872_vm3, %v2332_v8  ;;  %v2137_v16 = vadd.f32 %v2105_v31, %v2068_v35  ;;  %v1312_v42 = vmul.f32 %v3958_v47, %v3921_v10  ;;  %v1313_v57 = vmul.f32 %v3958_v47, %v3929_v59  ;;  %v1606_v40 = vmul.f32 %v3967_v63, %v4011_v14 }
 0x184   : > { %v2138_v30 = vadd.f32 %v2106_v41, %v2069_v6  ;;  %v1275_v29 = vadd.f32 %v1243_v15, %v1174_v7  ;;  %v1276_v33 = vadd.f32 %v1244_v48, %v1175_v54  ;;  %v1607_v45 = vmul.f32 %v3967_v63, %v3998_v34 }
 0x185   : > { %v2206_v21 = vadd.f32 %v2174_v18, %v2137_v16  ;;  %v1675_v10 = vmul.f32 %v3819_v28, %v3973_v0  ;;  %v1676_v59 = vmul.f32 %v3819_v28, %v3975_v52  ;;  %v1744_v26 = vmul.f32 %v3984_v13, %v4015_v39 }
 0x186   : > { %v2207_v55 = vadd.f32 %v2175_v9, %v2138_v30  ;;  %v1344_v58 = vadd.f32 %v1312_v42, %v1275_v29  ;;  %v1345_v43 = vadd.f32 %v1313_v57, %v1276_v33  ;;  %v1745_v61 = vmul.f32 %v3984_v13, %v4028_v27 }
 0x187   : > { %v2245_v62 = vadd.f32 %v4075_v51, %v2206_v21  ;;  %v1832_v3 = vrot.slane %v4060_v49, 7  ;;  %v1848_v22 = vrot.slane %v4062_v37, 7  ;;  %v1928_v4 = vrot.slane %v4060_v49, 1 }
 0x188   : > { %v2246_v2 = vadd.f32 %v4075_v51, %v2207_v55  ;;  %v1638_v5 = vadd.f32 %v1606_v40, %v1344_v58  ;;  %v1639_v31 = vadd.f32 %v1607_v45, %v1345_v43  ;;  %v1944_v1 = vrot.slane %v4062_v37, 1  ;;  %v4136_v55 = vld [vmem:[#allocation2 + $0xc8] sm:$0xff] }
 0x189   : > { %v2277_v11 = vmax.f32 %v2245_v62, 0.0  ;;  %v4085_v38 = vsel %vm989_vm4, %v1832_v3, %v1848_v22  ;;  %v1880_v32 = vsel %vm989_vm4, %v1848_v22, %v1832_v3  ;;  %v2107_v19 = vmul.f32 %v4005_v53, %v4060_v49 }
 0x18a   : > { %v2278_v20 = vmax.f32 %v2246_v2, 0.0  ;;  %v1707_v24 = vadd.f32 %v1675_v10, %v1638_v5  ;;  %v1708_v50 = vadd.f32 %v1676_v59, %v1639_v31  ;;  %v4093_v25 = vsel %vm921_vm6, 0.0, %v1880_v32  ;;  %v4132_v59 = vld [vmem:[#allocation2 + $0xc0] sm:$0xff] }
 0x18b   : > { %v2309_v60 = vmin.f32 %v2277_v11, 6.0  ;;  %v4097_v17 = vsel %vm1086_vm5, %v1928_v4, %v1944_v1  ;;  %v1976_v41 = vsel %vm1086_vm5, %v1944_v1, %v1928_v4  ;;  %v2038_v18 = vmul.f32 %v4022_v46, %v4093_v25 }
 0x18c   : > { %v2310_v8 = vmin.f32 %v2278_v20, 6.0  ;;  %v1776_v35 = vadd.f32 %v1744_v26, %v1707_v24  ;;  %v1777_v9 = vadd.f32 %v1745_v61, %v1708_v50  ;;  %v4105_v7 = vsel %vm924_vm7, 0.0, %v1976_v41 }
 0x18d   : > { %v2039_v6 = vmul.f32 %v4022_v46, %v4085_v38  ;;  %v2108_v54 = vmul.f32 %v4005_v53, %v4062_v37  ;;  %v2176_v15 = vmul.f32 %v4037_v36, %v4097_v17  ;;  %v2177_v48 = vmul.f32 %v4037_v36, %v4105_v7 }
 0x18e   : > { %v2333_v16 = vpack.c.bf16 %v2310_v8, %v2309_v60  ;;  %v2070_v42 = vadd.f32 %v2038_v18, %v1776_v35  ;;  %v1176_v57 = vmul.f32 %v3944_v56, %v4011_v14  ;;  %v1177_v40 = vmul.f32 %v3944_v56, %v3998_v34 }
 0x18f   : > { %v2071_v30 = vadd.f32 %v2039_v6, %v1777_v9  ;;  %v1245_v29 = vmul.f32 %v3877_v44, %v3973_v0  ;;  %v1246_v33 = vmul.f32 %v3877_v44, %v3975_v52  ;;  %v1314_v45 = vmul.f32 %v3958_v47, %v4015_v39 }
 0x190   : > { %2971 = vmatprep.mubr.msk.bf16.mxu1 %vm872_vm3, %v2333_v16  ;;  %v2139_v21 = vadd.f32 %v2107_v19, %v2070_v42  ;;  %v1315_v10 = vmul.f32 %v3958_v47, %v4028_v27  ;;  %v1608_v14 = vmul.f32 %v3967_v63, %v4093_v25  ;;  %v1609_v34 = vmul.f32 %v3967_v63, %v4085_v38 }
 0x191   : > { %v2140_v0 = vadd.f32 %v2108_v54, %v2071_v30  ;;  %v1277_v26 = vadd.f32 %v1245_v29, %v1176_v57  ;;  %v1278_v52 = vadd.f32 %v1246_v33, %v1177_v40  ;;  %v1677_v39 = vmul.f32 %v3819_v28, %v4060_v49 }
 0x192   : > { %v2208_v58 = vadd.f32 %v2176_v15, %v2139_v21  ;;  %v1678_v27 = vmul.f32 %v3819_v28, %v4062_v37  ;;  %v1746_v43 = vmul.f32 %v3984_v13, %v4097_v17  ;;  %v1747_v61 = vmul.f32 %v3984_v13, %v4105_v7 }
 0x193   : > { %v2209_v62 = vadd.f32 %v2177_v48, %v2140_v0  ;;  %v1346_v3 = vadd.f32 %v1314_v45, %v1277_v26  ;;  %v1347_v22 = vadd.f32 %v1315_v10, %v1278_v52  ;;  %v1833_v4 = vrot.slane %v4132_v59, 7 }
 0x194   : > { %v2247_v2 = vadd.f32 %v4075_v51, %v2208_v58  ;;  %v1849_v5 = vrot.slane %v4136_v55, 7  ;;  %v1929_v31 = vrot.slane %v4132_v59, 1  ;;  %v1945_v1 = vrot.slane %v4136_v55, 1 }
 0x195   : > { %v2248_v11 = vadd.f32 %v4075_v51, %v2209_v62  ;;  %v1640_v32 = vadd.f32 %v1608_v14, %v1346_v3  ;;  %v1641_v19 = vadd.f32 %v1609_v34, %v1347_v22  ;;  %v2109_v20 = vmul.f32 %v4005_v53, %v4132_v59 }
 0x196   : > { %v2279_v24 = vmax.f32 %v2247_v2, 0.0  ;;  %v4154_v50 = vsel %vm989_vm4, %v1833_v4, %v1849_v5  ;;  %v1881_v60 = vsel %vm989_vm4, %v1849_v5, %v1833_v4  ;;  %v4160_v41 = vsel %vm1086_vm5, %v1929_v31, %v1945_v1 }
 0x197   : > { %v2280_v18 = vmax.f32 %v2248_v11, 0.0  ;;  %v1709_v8 = vadd.f32 %v1677_v39, %v1640_v32  ;;  %v1710_v35 = vadd.f32 %v1678_v27, %v1641_v19  ;;  %v4164_v9 = vsel %vm921_vm6, 0.0, %v1881_v60 }
 0x198   : > { %v2311_v6 = vmin.f32 %v2279_v24, 6.0  ;;  %v1977_v54 = vsel %vm1086_vm5, %v1945_v1, %v1929_v31  ;;  %v2040_v15 = vmul.f32 %v4022_v46, %v4164_v9  ;;  %v2041_v48 = vmul.f32 %v4022_v46, %v4154_v50 }
 0x199   : > { %v2312_v16 = vmin.f32 %v2280_v18, 6.0  ;;  %v1778_v42 = vadd.f32 %v1746_v43, %v1709_v8  ;;  %v1779_v57 = vadd.f32 %v1747_v61, %v1710_v35  ;;  %v4174_v40 = vsel %vm924_vm7, 0.0, %v1977_v54  ;;  %v4201_v43 = vld [vmem:[#allocation2 + $0xd8] sm:$0xff] }
 0x19a   : > { %v2110_v30 = vmul.f32 %v4005_v53, %v4136_v55  ;;  %v2178_v29 = vmul.f32 %v4037_v36, %v4160_v41  ;;  %v2179_v33 = vmul.f32 %v4037_v36, %v4174_v40  ;;  %v1178_v45 = vmul.f32 %v3944_v56, %v4093_v25 }
 0x19b   : > { %v2334_v21 = vpack.c.bf16 %v2312_v16, %v2311_v6  ;;  %v2072_v10 = vadd.f32 %v2040_v15, %v1778_v42  ;;  %v2073_v14 = vadd.f32 %v2041_v48, %v1779_v57  ;;  %v1179_v34 = vmul.f32 %v3944_v56, %v4085_v38 }
 0x19c   : > { %v1247_v0 = vmul.f32 %v3877_v44, %v4060_v49  ;;  %v1248_v26 = vmul.f32 %v3877_v44, %v4062_v37  ;;  %v1316_v52 = vmul.f32 %v3958_v47, %v4097_v17  ;;  %v1317_v39 = vmul.f32 %v3958_v47, %v4105_v7  ;;  %v4199_v49 = vld [vmem:[#allocation2 + $0xd0] sm:$0xff] }
 0x19d   : > { %2972 = vmatmul.mubr.msk.bf16.gmra.mrb[16].mxu1 %vm872_vm3, %v2334_v21  ;;  %v2141_v25 = vadd.f32 %v2109_v20, %v2072_v10  ;;  %v2142_v58 = vadd.f32 %v2110_v30, %v2073_v14  ;;  %v1610_v27 = vmul.f32 %v3967_v63, %v4164_v9  ;;  %v1611_v38 = vmul.f32 %v3967_v63, %v4154_v50 }
 0x19e   : > { %v1279_v37 = vadd.f32 %v1247_v0, %v1178_v45  ;;  %v1280_v61 = vadd.f32 %v1248_v26, %v1179_v34  ;;  %v1679_v17 = vmul.f32 %v3819_v28, %v4132_v59  ;;  %v1680_v7 = vmul.f32 %v3819_v28, %v4136_v55 }
 0x19f   : > { %v2210_v62 = vadd.f32 %v2178_v29, %v2141_v25  ;;  %v2211_v3 = vadd.f32 %v2179_v33, %v2142_v58  ;;  %v1748_v22 = vmul.f32 %v3984_v13, %v4160_v41  ;;  %v1749_v4 = vmul.f32 %v3984_v13, %v4174_v40 }
 0x1a0   : > { %v1348_v2 = vadd.f32 %v1316_v52, %v1279_v37  ;;  %v1349_v5 = vadd.f32 %v1317_v39, %v1280_v61  ;;  %v1834_v31 = vrot.slane %v4199_v49, 7  ;;  %v1850_v1 = vrot.slane %v4201_v43, 7 }
 0x1a1   : > { %v2249_v11 = vadd.f32 %v4075_v51, %v2210_v62  ;;  %v2250_v32 = vadd.f32 %v4075_v51, %v2211_v3  ;;  %v1930_v19 = vrot.slane %v4199_v49, 1  ;;  %v1946_v20 = vrot.slane %v4201_v43, 1  ;;  %v4266_v3 = vld [vmem:[#allocation2 + $0xe0] sm:$0xff] }
 0x1a2   : > { %v1642_v24 = vadd.f32 %v1610_v27, %v1348_v2  ;;  %v1643_v60 = vadd.f32 %v1611_v38, %v1349_v5  ;;  %v4219_v18 = vsel %vm989_vm4, %v1834_v31, %v1850_v1  ;;  %v1882_v8 = vsel %vm989_vm4, %v1850_v1, %v1834_v31 }
 0x1a3   : > { %v2281_v35 = vmax.f32 %v2249_v11, 0.0  ;;  %v2282_v6 = vmax.f32 %v2250_v32, 0.0  ;;  %v4225_v54 = vsel %vm921_vm6, 0.0, %v1882_v8  ;;  %v4229_v15 = vsel %vm1086_vm5, %v1930_v19, %v1946_v20 }
 0x1a4   : > { %v1711_v48 = vadd.f32 %v1679_v17, %v1642_v24  ;;  %v1712_v16 = vadd.f32 %v1680_v7, %v1643_v60  ;;  %v1978_v42 = vsel %vm1086_vm5, %v1946_v20, %v1930_v19  ;;  %v2042_v57 = vmul.f32 %v4022_v46, %v4225_v54 }
 0x1a5   : > { %v2313_v30 = vmin.f32 %v2281_v35, 6.0  ;;  %v2314_v29 = vmin.f32 %v2282_v6, 6.0  ;;  %v4237_v33 = vsel %vm924_vm7, 0.0, %v1978_v42  ;;  %v2043_v45 = vmul.f32 %v4022_v46, %v4219_v18 }
 0x1a6   : > { %v1780_v21 = vadd.f32 %v1748_v22, %v1711_v48  ;;  %v1781_v10 = vadd.f32 %v1749_v4, %v1712_v16  ;;  %v2111_v14 = vmul.f32 %v4005_v53, %v4199_v49  ;;  %v2112_v34 = vmul.f32 %v4005_v53, %v4201_v43  ;;  %v4268_v22 = vld [vmem:[#allocation2 + $0xe8] sm:$0xff] }
 0x1a7   : > { %v2335_v0 = vpack.c.bf16 %v2314_v29, %v2313_v30  ;;  %v2180_v26 = vmul.f32 %v4037_v36, %v4229_v15  ;;  %v2181_v52 = vmul.f32 %v4037_v36, %v4237_v33  ;;  %v1180_v39 = vmul.f32 %v3944_v56, %v4164_v9 }
 0x1a8   : > { %v2074_v25 = vadd.f32 %v2042_v57, %v1780_v21  ;;  %v2075_v58 = vadd.f32 %v2043_v45, %v1781_v10  ;;  %v1181_v27 = vmul.f32 %v3944_v56, %v4154_v50  ;;  %v1249_v38 = vmul.f32 %v3877_v44, %v4132_v59 }
 0x1a9   : > { %2975 = vmatprep.mubr.msk.bf16.mxu1 %vm872_vm3, %v2335_v0  ;;  %v1250_v37 = vmul.f32 %v3877_v44, %v4136_v55  ;;  %v1318_v61 = vmul.f32 %v3958_v47, %v4160_v41  ;;  %v1319_v17 = vmul.f32 %v3958_v47, %v4174_v40  ;;  %v1612_v9 = vmul.f32 %v3967_v63, %v4225_v54 }
 0x1aa   : > { %v2143_v7 = vadd.f32 %v2111_v14, %v2074_v25  ;;  %v2144_v62 = vadd.f32 %v2112_v34, %v2075_v58  ;;  %v1281_v50 = vadd.f32 %v1249_v38, %v1180_v39  ;;  %v1613_v59 = vmul.f32 %v3967_v63, %v4219_v18 }
 0x1ab   : > { %v1282_v55 = vadd.f32 %v1250_v37, %v1181_v27  ;;  %v1681_v41 = vmul.f32 %v3819_v28, %v4199_v49  ;;  %v1682_v40 = vmul.f32 %v3819_v28, %v4201_v43  ;;  %v1750_v4 = vmul.f32 %v3984_v13, %v4229_v15 }
 0x1ac   : > { %v2212_v2 = vadd.f32 %v2180_v26, %v2143_v7  ;;  %v2213_v5 = vadd.f32 %v2181_v52, %v2144_v62  ;;  %v1350_v31 = vadd.f32 %v1318_v61, %v1281_v50  ;;  %v1751_v1 = vmul.f32 %v3984_v13, %v4237_v33 }
 0x1ad   : > { %v1351_v11 = vadd.f32 %v1319_v17, %v1282_v55  ;;  %v1835_v32 = vrot.slane %v4266_v3, 7  ;;  %v1851_v19 = vrot.slane %v4268_v22, 7  ;;  %v1931_v20 = vrot.slane %v4266_v3, 1 }
 0x1ae   : > { %v2251_v24 = vadd.f32 %v4075_v51, %v2212_v2  ;;  %v2252_v60 = vadd.f32 %v4075_v51, %v2213_v5  ;;  %v1644_v8 = vadd.f32 %v1612_v9, %v1350_v31  ;;  %v1947_v35 = vrot.slane %v4268_v22, 1  ;;  %v4333_v5 = vld [vmem:[#allocation2 + $0xf0] sm:$0xff] }
 0x1af   : > { %v1645_v6 = vadd.f32 %v1613_v59, %v1351_v11  ;;  %v4286_v48 = vsel %vm989_vm4, %v1835_v32, %v1851_v19  ;;  %v1883_v16 = vsel %vm989_vm4, %v1851_v19, %v1835_v32  ;;  %v2113_v42 = vmul.f32 %v4005_v53, %v4266_v3 }
 0x1b0   : > { %v2283_v57 = vmax.f32 %v2251_v24, 0.0  ;;  %v2284_v30 = vmax.f32 %v2252_v60, 0.0  ;;  %v1713_v29 = vadd.f32 %v1681_v41, %v1644_v8  ;;  %v4294_v45 = vsel %vm921_vm6, 0.0, %v1883_v16 }
 0x1b1   : > { %v1714_v21 = vadd.f32 %v1682_v40, %v1645_v6  ;;  %v4298_v10 = vsel %vm1086_vm5, %v1931_v20, %v1947_v35  ;;  %v1979_v14 = vsel %vm1086_vm5, %v1947_v35, %v1931_v20  ;;  %v2044_v34 = vmul.f32 %v4022_v46, %v4294_v45 }
 0x1b2   : > { %v2315_v0 = vmin.f32 %v2283_v57, 6.0  ;;  %v2316_v26 = vmin.f32 %v2284_v30, 6.0  ;;  %v1782_v52 = vadd.f32 %v1750_v4, %v1713_v29  ;;  %v4306_v39 = vsel %vm924_vm7, 0.0, %v1979_v14 }
 0x1b3   : > { %v1783_v25 = vadd.f32 %v1751_v1, %v1714_v21  ;;  %v2045_v58 = vmul.f32 %v4022_v46, %v4286_v48  ;;  %v2114_v27 = vmul.f32 %v4005_v53, %v4268_v22  ;;  %v2182_v38 = vmul.f32 %v4037_v36, %v4298_v10 }
 0x1b4   : > { %v2336_v37 = vpack.c.bf16 %v2316_v26, %v2315_v0  ;;  %v2076_v61 = vadd.f32 %v2044_v34, %v1782_v52  ;;  %v2183_v17 = vmul.f32 %v4037_v36, %v4306_v39  ;;  %v1182_v9 = vmul.f32 %v3944_v56, %v4225_v54 }
 0x1b5   : > { %v2077_v7 = vadd.f32 %v2045_v58, %v1783_v25  ;;  %v1183_v62 = vmul.f32 %v3944_v56, %v4219_v18  ;;  %v1251_v50 = vmul.f32 %v3877_v44, %v4199_v49  ;;  %v1252_v59 = vmul.f32 %v3877_v44, %v4201_v43  ;;  %v4335_v43 = vld [vmem:[#allocation2 + $0xf8] sm:$0xff] }
 0x1b6   : > { %2976 = vmatmul.mubr.msk.bf16.gmra.mrb[20].mxu1 %vm872_vm3, %v2336_v37  ;;  %v2145_v55 = vadd.f32 %v2113_v42, %v2076_v61  ;;  %v1320_v41 = vmul.f32 %v3958_v47, %v4229_v15  ;;  %v1321_v40 = vmul.f32 %v3958_v47, %v4237_v33  ;;  %v1614_v54 = vmul.f32 %v3967_v63, %v4294_v45 }
 0x1b7   : > { %v2146_v4 = vadd.f32 %v2114_v27, %v2077_v7  ;;  %v1283_v18 = vadd.f32 %v1251_v50, %v1182_v9  ;;  %v1284_v2 = vadd.f32 %v1252_v59, %v1183_v62  ;;  %v1615_v49 = vmul.f32 %v3967_v63, %v4286_v48 }
 0x1b8   : > { %v2214_v31 = vadd.f32 %v2182_v38, %v2145_v55  ;;  %v1683_v15 = vmul.f32 %v3819_v28, %v4266_v3  ;;  %v1684_v33 = vmul.f32 %v3819_v28, %v4268_v22  ;;  %v1752_v1 = vmul.f32 %v3984_v13, %v4298_v10 }
 0x1b9   : > { %v2215_v11 = vadd.f32 %v2183_v17, %v2146_v4  ;;  %v1352_v32 = vadd.f32 %v1320_v41, %v1283_v18  ;;  %v1353_v19 = vadd.f32 %v1321_v40, %v1284_v2  ;;  %v1753_v20 = vmul.f32 %v3984_v13, %v4306_v39 }
 0x1ba   : > { %v2253_v24 = vadd.f32 %v4075_v51, %v2214_v31  ;;  %v1836_v60 = vrot.slane %v4333_v5, 7  ;;  %v1852_v8 = vrot.slane %v4335_v43, 7  ;;  %v1932_v35 = vrot.slane %v4333_v5, 1 }
 0x1bb   : > { %v2254_v6 = vadd.f32 %v4075_v51, %v2215_v11  ;;  %v1646_v16 = vadd.f32 %v1614_v54, %v1352_v32  ;;  %v1647_v42 = vadd.f32 %v1615_v49, %v1353_v19  ;;  %v1948_v57 = vrot.slane %v4335_v43, 1 }
 0x1bc   : > { %v2285_v30 = vmax.f32 %v2253_v24, 0.0  ;;  %v4353_v29 = vsel %vm989_vm4, %v1836_v60, %v1852_v8  ;;  %v1884_v21 = vsel %vm989_vm4, %v1852_v8, %v1836_v60  ;;  %v2115_v14 = vmul.f32 %v4005_v53, %v4333_v5 }
 0x1bd   : > { %v2286_v34 = vmax.f32 %v2254_v6, 0.0  ;;  %v1715_v0 = vadd.f32 %v1683_v15, %v1646_v16  ;;  %v1716_v26 = vadd.f32 %v1684_v33, %v1647_v42  ;;  %v4361_v52 = vsel %vm921_vm6, 0.0, %v1884_v21  ;;  %v1819_v33 = vld [vmem:[#allocation2 + $0x100] sm:$0xff] }
 0x1be   : > { %v2317_v25 = vmin.f32 %v2285_v30, 6.0  ;;  %v4365_v58 = vsel %vm1086_vm5, %v1932_v35, %v1948_v57  ;;  %v1980_v27 = vsel %vm1086_vm5, %v1948_v57, %v1932_v35  ;;  %v2046_v38 = vmul.f32 %v4022_v46, %v4361_v52 }
 0x1bf   : > { %v2318_v37 = vmin.f32 %v2286_v34, 6.0  ;;  %v1784_v61 = vadd.f32 %v1752_v1, %v1715_v0  ;;  %v1785_v17 = vadd.f32 %v1753_v20, %v1716_v26  ;;  %v4373_v9 = vsel %vm924_vm7, 0.0, %v1980_v27 }
 0x1c0   : > { %v2047_v7 = vmul.f32 %v4022_v46, %v4353_v29  ;;  %v2116_v62 = vmul.f32 %v4005_v53, %v4335_v43  ;;  %v2184_v50 = vmul.f32 %v4037_v36, %v4365_v58  ;;  %v2185_v59 = vmul.f32 %v4037_v36, %v4373_v9 }
 0x1c1   : > { %v2337_v55 = vpack.c.bf16 %v2318_v37, %v2317_v25  ;;  %v2078_v41 = vadd.f32 %v2046_v38, %v1784_v61  ;;  %v1184_v40 = vmul.f32 %v3944_v56, %v4294_v45  ;;  %v1185_v54 = vmul.f32 %v3944_v56, %v4286_v48 }
 0x1c2   : > { %v2079_v4 = vadd.f32 %v2047_v7, %v1785_v17  ;;  %v1253_v18 = vmul.f32 %v3877_v44, %v4266_v3  ;;  %v1254_v2 = vmul.f32 %v3877_v44, %v4268_v22  ;;  %v1322_v49 = vmul.f32 %v3958_v47, %v4298_v10  ;;  %v1820_v10 = vld [vmem:[#allocation2 + $0x108] sm:$0xff] }
 0x1c3   : > { %2979 = vmatprep.mubr.msk.bf16.mxu1 %vm872_vm3, %v2337_v55  ;;  %v2147_v31 = vadd.f32 %v2115_v14, %v2078_v41  ;;  %v1323_v15 = vmul.f32 %v3958_v47, %v4306_v39  ;;  %v1616_v45 = vmul.f32 %v3967_v63, %v4361_v52  ;;  %v1617_v48 = vmul.f32 %v3967_v63, %v4353_v29 }
 0x1c4   : > { %v2148_v3 = vadd.f32 %v2116_v62, %v2079_v4  ;;  %v1285_v1 = vadd.f32 %v1253_v18, %v1184_v40  ;;  %v1286_v11 = vadd.f32 %v1254_v2, %v1185_v54  ;;  %v1685_v22 = vmul.f32 %v3819_v28, %v4333_v5 }
 0x1c5   : > { %v2216_v32 = vadd.f32 %v2184_v50, %v2147_v31  ;;  %v1686_v19 = vmul.f32 %v3819_v28, %v4335_v43  ;;  %v1754_v39 = vmul.f32 %v3984_v13, %v4365_v58  ;;  %v1755_v20 = vmul.f32 %v3984_v13, %v4373_v9 }
 0x1c6   : > { %v2217_v24 = vadd.f32 %v2185_v59, %v2148_v3  ;;  %v1354_v60 = vadd.f32 %v1322_v49, %v1285_v1  ;;  %v1355_v8 = vadd.f32 %v1323_v15, %v1286_v11  ;;  %v1837_v35 = vrot.slane %v1819_v33, 7 }
 0x1c7   : > { %v2255_v6 = vadd.f32 %v4075_v51, %v2216_v32  ;;  %v1853_v16 = vrot.slane %v1820_v10, 7  ;;  %v1933_v42 = vrot.slane %v1819_v33, 1  ;;  %v1949_v57 = vrot.slane %v1820_v10, 1 }
 0x1c8   : > { %v2256_v30 = vadd.f32 %v4075_v51, %v2217_v24  ;;  %v1648_v21 = vadd.f32 %v1616_v45, %v1354_v60  ;;  %v1649_v14 = vadd.f32 %v1617_v48, %v1355_v8  ;;  %v2117_v34 = vmul.f32 %v4005_v53, %v1819_v33 }
 0x1c9   : > { %v2287_v0 = vmax.f32 %v2255_v6, 0.0  ;;  %v1869_v26 = vsel %vm989_vm4, %v1837_v35, %v1853_v16  ;;  %v1885_v25 = vsel %vm989_vm4, %v1853_v16, %v1837_v35  ;;  %v1965_v27 = vsel %vm1086_vm5, %v1933_v42, %v1949_v57 }
 0x1ca   : > { %v2288_v38 = vmax.f32 %v2256_v30, 0.0  ;;  %v1717_v37 = vadd.f32 %v1685_v22, %v1648_v21  ;;  %v1718_v61 = vadd.f32 %v1686_v19, %v1649_v14  ;;  %v1915_v17 = vsel %vm921_vm6, 0.0, %v1885_v25 }
 0x1cb   : > { %v2319_v7 = vmin.f32 %v2287_v0, 6.0  ;;  %v1981_v62 = vsel %vm1086_vm5, %v1949_v57, %v1933_v42  ;;  %v2048_v50 = vmul.f32 %v4022_v46, %v1915_v17  ;;  %v2049_v59 = vmul.f32 %v4022_v46, %v1869_v26 }
 0x1cc   : > { %v2320_v55 = vmin.f32 %v2288_v38, 6.0  ;;  %v1786_v41 = vadd.f32 %v1754_v39, %v1717_v37  ;;  %v1787_v40 = vadd.f32 %v1755_v20, %v1718_v61  ;;  %v2012_v54 = vsel %vm924_vm7, 0.0, %v1981_v62  ;;  %v1822_v39 = vld [vmem:[#allocation2 + $0x118] sm:$0xff] }
 0x1cd   : > { %v2118_v4 = vmul.f32 %v4005_v53, %v1820_v10  ;;  %v2186_v18 = vmul.f32 %v4037_v36, %v1965_v27  ;;  %v2187_v2 = vmul.f32 %v4037_v36, %v2012_v54  ;;  %v1186_v49 = vmul.f32 %v3944_v56, %v4361_v52 }
 0x1ce   : > { %v2338_v31 = vpack.c.bf16 %v2320_v55, %v2319_v7  ;;  %v2080_v15 = vadd.f32 %v2048_v50, %v1786_v41  ;;  %v2081_v45 = vadd.f32 %v2049_v59, %v1787_v40  ;;  %v1187_v48 = vmul.f32 %v3944_v56, %v4353_v29  ;;  %v1821_v29 = vld [vmem:[#allocation2 + $0x110] sm:$0xff] }
 0x1cf   : > { %v1255_v3 = vmul.f32 %v3877_v44, %v4333_v5  ;;  %v1256_v1 = vmul.f32 %v3877_v44, %v4335_v43  ;;  %v1324_v11 = vmul.f32 %v3958_v47, %v4365_v58  ;;  %v1325_v22 = vmul.f32 %v3958_v47, %v4373_v9 }
 0x1d0   : > { %2980 = vmatmul.mubr.msk.bf16.gmra.mrb[24].mxu1 %vm872_vm3, %v2338_v31  ;;  %v2149_v52 = vadd.f32 %v2117_v34, %v2080_v15  ;;  %v2150_v32 = vadd.f32 %v2118_v4, %v2081_v45  ;;  %v1618_v19 = vmul.f32 %v3967_v63, %v1915_v17  ;;  %v1619_v56 = vmul.f32 %v3967_v63, %v1869_v26 }
 0x1d1   : > { %v1287_v5 = vadd.f32 %v1255_v3, %v1186_v49  ;;  %v1288_v20 = vadd.f32 %v1256_v1, %v1187_v48  ;;  %v1687_v44 = vmul.f32 %v3819_v28, %v1819_v33  ;;  %v1688_v43 = vmul.f32 %v3819_v28, %v1820_v10  ;;  %v4474_v48 = vld [vmem:[%s4627_s8] ss:$0 sm:$0xff]  ;;  %v2575_v1 = vld [vmem:[%s3128_s18 + $0x10] sm:$0xff] }
 0x1d2   : > { %v2218_v58 = vadd.f32 %v2186_v18, %v2149_v52  ;;  %v2219_v24 = vadd.f32 %v2187_v2, %v2150_v32  ;;  %v1756_v47 = vmul.f32 %v3984_v13, %v1965_v27  ;;  %v1757_v9 = vmul.f32 %v3984_v13, %v2012_v54 }
 0x1d3   : > { %v1356_v60 = vadd.f32 %v1324_v11, %v1287_v5  ;;  %v1357_v8 = vadd.f32 %v1325_v22, %v1288_v20  ;;  %v1838_v35 = vrot.slane %v1821_v29, 7  ;;  %v1854_v6 = vrot.slane %v1822_v39, 7  ;;  %v2574_v5 = vld [vmem:[%s3128_s18 + $0x8] sm:$0xff] }
 0x1d4   : > { %v2257_v63 = vadd.f32 %v4075_v51, %v2218_v58  ;;  %v2258_v16 = vadd.f32 %v4075_v51, %v2219_v24  ;;  %v1934_v42 = vrot.slane %v1821_v29, 1  ;;  %v1950_v57 = vrot.slane %v1822_v39, 1 }
 0x1d5   : > { %v1650_v30 = vadd.f32 %v1618_v19, %v1356_v60  ;;  %v1651_v33 = vadd.f32 %v1619_v56, %v1357_v8  ;;  %v1870_v28 = vsel %vm989_vm4, %v1838_v35, %v1854_v6  ;;  %v1886_v10 = vsel %vm989_vm4, %v1854_v6, %v1838_v35  ;;  %v2576_v19 = vld [vmem:[%s3128_s18 + $0x18] sm:$0xff]  ;;  %v2577_v8 = vld [vmem:[%s3128_s18 + $0x20] sm:$0xff] }
 0x1d6   : > { %v2289_v21 = vmax.f32 %v2257_v63, 0.0  ;;  %v2290_v13 = vmax.f32 %v2258_v16, 0.0  ;;  %v1917_v14 = vsel %vm921_vm6, 0.0, %v1886_v10  ;;  %v1966_v34 = vsel %vm1086_vm5, %v1934_v42, %v1950_v57  ;;  %v2580_v63 = vld [vmem:[%s3128_s18 + $0x38] sm:$0xff] }
 0x1d7   : > { %v1719_v0 = vadd.f32 %v1687_v44, %v1650_v30  ;;  %v1720_v26 = vadd.f32 %v1688_v43, %v1651_v33  ;;  %v1982_v25 = vsel %vm1086_vm5, %v1950_v57, %v1934_v42  ;;  %v2050_v27 = vmul.f32 %v4022_v46, %v1917_v14  ;;  %v2578_v30 = vld [vmem:[%s3128_s18 + $0x28] sm:$0xff]  ;;  %v2583_v14 = vld [vmem:[%s3128_s18 + $0x50] sm:$0xff] }
 0x1d8   : > { %v2321_v38 = vmin.f32 %v2289_v21, 6.0  ;;  %v2322_v37 = vmin.f32 %v2290_v13, 6.0  ;;  %v2014_v61 = vsel %vm924_vm7, 0.0, %v1982_v25  ;;  %v2051_v17 = vmul.f32 %v4022_v46, %v1870_v28 }
 0x1d9   : > { %v1788_v7 = vadd.f32 %v1756_v47, %v1719_v0  ;;  %v1789_v62 = vadd.f32 %v1757_v9, %v1720_v26  ;;  %v2119_v50 = vmul.f32 %v4005_v53, %v1821_v29  ;;  %v2120_v59 = vmul.f32 %v4005_v53, %v1822_v39  ;;  %v2579_v47 = vld [vmem:[%s3128_s18 + $0x30] sm:$0xff]  ;;  %v2581_v26 = vld [vmem:[%s3128_s18 + $0x40] sm:$0xff] }
 0x1da   : > { %v2339_v55 = vpack.c.bf16 %v2322_v37, %v2321_v38  ;;  %v2188_v12 = vmul.f32 %v4037_v36, %v1966_v34  ;;  %v2189_v54 = vmul.f32 %v4037_v36, %v2014_v61  ;;  %v2584_v38 = vld [vmem:[%s3128_s18 + $0x58] sm:$0xff] }
 0x1db   : > { %v2082_v41 = vadd.f32 %v2050_v27, %v1788_v7  ;;  %v2083_v40 = vadd.f32 %v2051_v17, %v1789_v62  ;;  %v2582_v7 = vld [vmem:[%s3128_s18 + $0x48] sm:$0xff] }
 0x1dc   : > { %2983 = vmatprep.mubr.msk.bf16.mxu1 %vm872_vm3, %v2339_v55 }
 0x1dd   : > { %v2151_v23 = vadd.f32 %v2119_v50, %v2082_v41  ;;  %v2152_v4 = vadd.f32 %v2120_v59, %v2083_v40  ;;  %v2587_v40 = vld [vmem:[%s3128_s18 + $0x70] sm:$0xff] }
 0x1df   : > { %v2220_v46 = vadd.f32 %v2188_v12, %v2151_v23  ;;  %v2221_v18 = vadd.f32 %v2189_v54, %v2152_v4  ;;  %v2585_v23 = vld [vmem:[%s3128_s18 + $0x60] sm:$0xff] }
 0x1e1   : > { %v2259_v2 = vadd.f32 %v4075_v51, %v2220_v46  ;;  %v2260_v53 = vadd.f32 %v4075_v51, %v2221_v18  ;;  %v2573_v51 = vld [vmem:[%s3128_s18] sm:$0xff]  ;;  %v2588_v18 = vld [vmem:[%s3128_s18 + $0x78] sm:$0xff] }
 0x1e3   : > { %v2291_v49 = vmax.f32 %v2259_v2, 0.0  ;;  %v2292_v31 = vmax.f32 %v2260_v53, 0.0 }
 0x1e5   : > { %v2323_v15 = vmin.f32 %v2291_v49, 6.0  ;;  %v2324_v45 = vmin.f32 %v2292_v31, 6.0  ;;  %v2586_v31 = vld [vmem:[%s3128_s18 + $0x68] sm:$0xff] }
 0x1e7   : > { %v2340_v36 = vpack.c.bf16 %v2324_v45, %v2323_v15 }
 0x1e9   : > { %2984 = vmatmul.mubr.msk.bf16.gmra.mrb[28].mxu1 %vm872_vm3, %v2340_v36 }
 0x203   : > { %v2957_v3 = vpop.f32.mrb[0].mxu1 }
 0x204   : > { %v2455_v11 = vadd.f32 %v2957_v3, %v4474_v48  ;;  %v2446_v22 = vpop.f32.mrb[1].mxu1 }
 0x205   : > { %v2447_v52 = vadd.f32 %v4474_v48, %v2446_v22  ;;  %v2958_v32 = vpop.f32.mrb[2].mxu1 }
 0x206   : > { %v2607_v56 = vadd.f32 %v2575_v1, %v2455_v11  ;;  %v2458_v29 = vadd.f32 %v2958_v32, %v4474_v48  ;;  %v2449_v39 = vpop.f32.mrb[3].mxu1  ;;  %v2591_v11 = vld [vmem:[%s3128_s18 + $0x90] sm:$0xff] }
 0x207   : > { %v2605_v20 = vadd.f32 %v2573_v51, %v2447_v52  ;;  %v2450_v44 = vadd.f32 %v4474_v48, %v2449_v39  ;;  %v2589_v52 = vld [vmem:[%s3128_s18 + $0x80] sm:$0xff] }
 0x208   : > { %2639 = vst.msk [vmem:[%s4483_s28 + $0x10] sm:$0xff] %vm564_vm1, %v2607_v56  ;;  %v2608_v43 = vadd.f32 %v2576_v19, %v2458_v29  ;;  %v2592_v56 = vld [vmem:[%s3128_s18 + $0x98] sm:$0xff] }
 0x209   : > { %2637 = vst.msk [vmem:[%s4483_s28] sm:$0xff] %vm564_vm1, %v2605_v20  ;;  %v2606_v58 = vadd.f32 %v2574_v5, %v2450_v44  ;;  %v2590_v20 = vld [vmem:[%s3128_s18 + $0x88] sm:$0xff] }
 0x20a   : > { %2640 = vst.msk [vmem:[%s4483_s28 + $0x18] sm:$0xff] %vm564_vm1, %v2608_v43 }
 0x20b   : > { %2638 = vst.msk [vmem:[%s4483_s28 + $0x8] sm:$0xff] %vm564_vm1, %v2606_v58 }
 0x220   : > { %v2961_v24 = vpop.f32.mrb[4].mxu1 }
 0x221   : > { %v2471_v9 = vadd.f32 %v2961_v24, %v4474_v48  ;;  %v2462_v60 = vpop.f32.mrb[5].mxu1 }
 0x222   : > { %v2463_v35 = vadd.f32 %v4474_v48, %v2462_v60  ;;  %v2962_v6 = vpop.f32.mrb[6].mxu1 }
 0x223   : > { %v2611_v16 = vadd.f32 %v2579_v47, %v2471_v9  ;;  %v2474_v42 = vadd.f32 %v2962_v6, %v4474_v48  ;;  %v2465_v57 = vpop.f32.mrb[7].mxu1  ;;  %v2595_v9 = vld [vmem:[%s3128_s18 + $0xb0] sm:$0xff] }
 0x224   : > { %v2609_v33 = vadd.f32 %v2577_v8, %v2463_v35  ;;  %v2466_v28 = vadd.f32 %v4474_v48, %v2465_v57  ;;  %v2593_v35 = vld [vmem:[%s3128_s18 + $0xa0] sm:$0xff] }
 0x225   : > { %2643 = vst.msk [vmem:[%s4483_s28 + $0x30] sm:$0xff] %vm564_vm1, %v2611_v16  ;;  %v2612_v10 = vadd.f32 %v2580_v63, %v2474_v42  ;;  %v2596_v16 = vld [vmem:[%s3128_s18 + $0xb8] sm:$0xff] }
 0x226   : > { %2641 = vst.msk [vmem:[%s4483_s28 + $0x20] sm:$0xff] %vm564_vm1, %v2609_v33  ;;  %v2610_v21 = vadd.f32 %v2578_v30, %v2466_v28  ;;  %v2594_v33 = vld [vmem:[%s3128_s18 + $0xa8] sm:$0xff] }
 0x227   : > { %2644 = vst.msk [vmem:[%s4483_s28 + $0x38] sm:$0xff] %vm564_vm1, %v2612_v10 }
 0x228   : > { %2642 = vst.msk [vmem:[%s4483_s28 + $0x28] sm:$0xff] %vm564_vm1, %v2610_v21 }
 0x23c   : > { %v2965_v13 = vpop.f32.mrb[8].mxu1 }
 0x23d   : > { %v2487_v34 = vadd.f32 %v2965_v13, %v4474_v48  ;;  %v2478_v0 = vpop.f32.mrb[9].mxu1 }
 0x23e   : > { %v2479_v25 = vadd.f32 %v4474_v48, %v2478_v0  ;;  %v2966_v27 = vpop.f32.mrb[10].mxu1 }
 0x23f   : > { %v2615_v37 = vadd.f32 %v2583_v14, %v2487_v34  ;;  %v2490_v61 = vadd.f32 %v2966_v27, %v4474_v48  ;;  %v2481_v17 = vpop.f32.mrb[11].mxu1  ;;  %v2599_v34 = vld [vmem:[%s3128_s18 + $0xd0] sm:$0xff] }
 0x240   : > { %v2613_v62 = vadd.f32 %v2581_v26, %v2479_v25  ;;  %v2482_v50 = vadd.f32 %v4474_v48, %v2481_v17  ;;  %v2597_v25 = vld [vmem:[%s3128_s18 + $0xc0] sm:$0xff] }
 0x241   : > { %2647 = vst.msk [vmem:[%s4483_s28 + $0x50] sm:$0xff] %vm564_vm1, %v2615_v37  ;;  %v2616_v59 = vadd.f32 %v2584_v38, %v2490_v61  ;;  %v2600_v37 = vld [vmem:[%s3128_s18 + $0xd8] sm:$0xff] }
 0x242   : > { %2645 = vst.msk [vmem:[%s4483_s28 + $0x40] sm:$0xff] %vm564_vm1, %v2613_v62  ;;  %v2614_v55 = vadd.f32 %v2582_v7, %v2482_v50  ;;  %v2598_v62 = vld [vmem:[%s3128_s18 + $0xc8] sm:$0xff] }
 0x243   : > { %2648 = vst.msk [vmem:[%s4483_s28 + $0x58] sm:$0xff] %vm564_vm1, %v2616_v59 }
 0x244   : > { %2646 = vst.msk [vmem:[%s4483_s28 + $0x48] sm:$0xff] %vm564_vm1, %v2614_v55 }
 0x256   : > { %v2969_v41 = vpop.f32.mrb[12].mxu1 }
 0x257   : > { %v2503_v12 = vadd.f32 %v2969_v41, %v4474_v48  ;;  %v2494_v54 = vpop.f32.mrb[13].mxu1 }
 0x258   : > { %v2495_v4 = vadd.f32 %v4474_v48, %v2494_v54  ;;  %v2970_v46 = vpop.f32.mrb[14].mxu1 }
 0x259   : > { %v2619_v2 = vadd.f32 %v2587_v40, %v2503_v12  ;;  %v2506_v53 = vadd.f32 %v2970_v46, %v4474_v48  ;;  %v2497_v49 = vpop.f32.mrb[15].mxu1  ;;  %v2603_v12 = vld [vmem:[%s3128_s18 + $0xf0] sm:$0xff] }
 0x25a   : > { %v2617_v15 = vadd.f32 %v2585_v23, %v2495_v4  ;;  %v2498_v45 = vadd.f32 %v4474_v48, %v2497_v49  ;;  %v2601_v4 = vld [vmem:[%s3128_s18 + $0xe0] sm:$0xff] }
 0x25b   : > { %2651 = vst.msk [vmem:[%s4483_s28 + $0x70] sm:$0xff] %vm564_vm1, %v2619_v2  ;;  %v2620_v36 = vadd.f32 %v2588_v18, %v2506_v53  ;;  %v2604_v2 = vld [vmem:[%s3128_s18 + $0xf8] sm:$0xff] }
 0x25c   : > { %2649 = vst.msk [vmem:[%s4483_s28 + $0x60] sm:$0xff] %vm564_vm1, %v2617_v15  ;;  %v2618_v3 = vadd.f32 %v2586_v31, %v2498_v45  ;;  %v2602_v15 = vld [vmem:[%s3128_s18 + $0xe8] sm:$0xff] }
 0x25d   : > { %2652 = vst.msk [vmem:[%s4483_s28 + $0x78] sm:$0xff] %vm564_vm1, %v2620_v36 }
 0x25e   : > { %2650 = vst.msk [vmem:[%s4483_s28 + $0x68] sm:$0xff] %vm564_vm1, %v2618_v3 }
 0x270   : > { %v2973_v1 = vpop.f32.mrb[16].mxu1 }
 0x271   : > { %v2519_v22 = vadd.f32 %v2973_v1, %v4474_v48  ;;  %v2510_v51 = vpop.f32.mrb[17].mxu1 }
 0x272   : > { %v2511_v32 = vadd.f32 %v4474_v48, %v2510_v51  ;;  %v2974_v19 = vpop.f32.mrb[18].mxu1 }
 0x273   : > { %v2623_v29 = vadd.f32 %v2591_v11, %v2519_v22  ;;  %v2522_v39 = vadd.f32 %v2974_v19, %v4474_v48  ;;  %v2513_v5 = vpop.f32.mrb[19].mxu1 }
 0x274   : > { %v2621_v44 = vadd.f32 %v2589_v52, %v2511_v32  ;;  %v2514_v43 = vadd.f32 %v4474_v48, %v2513_v5 }
 0x275   : > { %2655 = vst.msk [vmem:[%s4483_s28 + $0x90] sm:$0xff] %vm564_vm1, %v2623_v29  ;;  %v2624_v58 = vadd.f32 %v2592_v56, %v2522_v39 }
 0x276   : > { %2653 = vst.msk [vmem:[%s4483_s28 + $0x80] sm:$0xff] %vm564_vm1, %v2621_v44  ;;  %v2622_v24 = vadd.f32 %v2590_v20, %v2514_v43 }
 0x277   : > { %2656 = vst.msk [vmem:[%s4483_s28 + $0x98] sm:$0xff] %vm564_vm1, %v2624_v58 }
 0x278   : > { %2654 = vst.msk [vmem:[%s4483_s28 + $0x88] sm:$0xff] %vm564_vm1, %v2622_v24 }
 0x289   : > { %v2977_v47 = vpop.f32.mrb[20].mxu1 }
 0x28a   : > { %v2535_v60 = vadd.f32 %v2977_v47, %v4474_v48  ;;  %v2526_v8 = vpop.f32.mrb[21].mxu1 }
 0x28b   : > { %v2527_v6 = vadd.f32 %v4474_v48, %v2526_v8  ;;  %v2978_v63 = vpop.f32.mrb[22].mxu1 }
 0x28c   : > { %v2627_v42 = vadd.f32 %v2595_v9, %v2535_v60  ;;  %v2538_v57 = vadd.f32 %v2978_v63, %v4474_v48  ;;  %v2529_v30 = vpop.f32.mrb[23].mxu1 }
 0x28d   : > { %v2625_v28 = vadd.f32 %v2593_v35, %v2527_v6  ;;  %v2530_v10 = vadd.f32 %v4474_v48, %v2529_v30 }
 0x28e   : > { %2659 = vst.msk [vmem:[%s4483_s28 + $0xb0] sm:$0xff] %vm564_vm1, %v2627_v42  ;;  %v2628_v21 = vadd.f32 %v2596_v16, %v2538_v57 }
 0x28f   : > { %2657 = vst.msk [vmem:[%s4483_s28 + $0xa0] sm:$0xff] %vm564_vm1, %v2625_v28  ;;  %v2626_v13 = vadd.f32 %v2594_v33, %v2530_v10 }
 0x290   : > { %2660 = vst.msk [vmem:[%s4483_s28 + $0xb8] sm:$0xff] %vm564_vm1, %v2628_v21 }
 0x291   : > { %2658 = vst.msk [vmem:[%s4483_s28 + $0xa8] sm:$0xff] %vm564_vm1, %v2626_v13 }
 0x2a3   : > { %v2981_v14 = vpop.f32.mrb[24].mxu1 }
 0x2a4   : > { %v2551_v0 = vadd.f32 %v2981_v14, %v4474_v48  ;;  %v2542_v26 = vpop.f32.mrb[25].mxu1 }
 0x2a5   : > { %v2543_v27 = vadd.f32 %v4474_v48, %v2542_v26  ;;  %v2982_v38 = vpop.f32.mrb[26].mxu1 }
 0x2a6   : > { %v2631_v61 = vadd.f32 %v2599_v34, %v2551_v0  ;;  %v2554_v17 = vadd.f32 %v2982_v38, %v4474_v48  ;;  %v2545_v7 = vpop.f32.mrb[27].mxu1 }
 0x2a7   : > { %v2629_v50 = vadd.f32 %v2597_v25, %v2543_v27  ;;  %v2546_v59 = vadd.f32 %v4474_v48, %v2545_v7 }
 0x2a8   : > { %2663 = vst.msk [vmem:[%s4483_s28 + $0xd0] sm:$0xff] %vm564_vm1, %v2631_v61  ;;  %v2632_v55 = vadd.f32 %v2600_v37, %v2554_v17 }
 0x2a9   : > { %2661 = vst.msk [vmem:[%s4483_s28 + $0xc0] sm:$0xff] %vm564_vm1, %v2629_v50  ;;  %v2630_v41 = vadd.f32 %v2598_v62, %v2546_v59 }
 0x2aa   : > { %2664 = vst.msk [vmem:[%s4483_s28 + $0xd8] sm:$0xff] %vm564_vm1, %v2632_v55 }
 0x2ab   : > { %2662 = vst.msk [vmem:[%s4483_s28 + $0xc8] sm:$0xff] %vm564_vm1, %v2630_v41 }
 0x2bc   : > { %v2985_v40 = vpop.f32.mrb[28].mxu1 }
 0x2bd   : > { %v2567_v54 = vadd.f32 %v2985_v40, %v4474_v48  ;;  %v2558_v23 = vpop.f32.mrb[29].mxu1 }
 0x2be   : > { %v2559_v46 = vadd.f32 %v4474_v48, %v2558_v23  ;;  %v2986_v18 = vpop.f32.mrb[30].mxu1 }
 0x2bf   : > { %v2635_v53 = vadd.f32 %v2603_v12, %v2567_v54  ;;  %v2570_v49 = vadd.f32 %v2986_v18, %v4474_v48  ;;  %v2561_v31 = vpop.f32.mrb[31].mxu1 }
 0x2c0   : > { %v2633_v45 = vadd.f32 %v2601_v4, %v2559_v46  ;;  %v2562_v36 = vadd.f32 %v4474_v48, %v2561_v31 }
 0x2c1   : > { %2667 = vst.msk [vmem:[%s4483_s28 + $0xf0] sm:$0xff] %vm564_vm1, %v2635_v53  ;;  %v2636_v3 = vadd.f32 %v2604_v2, %v2570_v49 }
 0x2c2   : > { %2665 = vst.msk [vmem:[%s4483_s28 + $0xe0] sm:$0xff] %vm564_vm1, %v2633_v45  ;;  %v2634_v1 = vadd.f32 %v2602_v15, %v2562_v36 }
 0x2c3   : > { %2668 = vst.msk [vmem:[%s4483_s28 + $0xf8] sm:$0xff] %vm564_vm1, %v2636_v3 }
 0x2c4   : > { %2666 = vst.msk [vmem:[%s4483_s28 + $0xe8] sm:$0xff] %vm564_vm1, %v2634_v1 }
 0x2c5 PF: > { %s19_s11 = sadd.s32 1, %s3048_s11   ;;  %s4629_s30 = smov %s3044_s10 }
 0x2c6   : > { %p16_p5 = scmp.ge.s32.totalorder %s19_s11, 4   ;;  %s4630_s10 = smov %s4632_s12 }
 0x2c8   :  { %18 = sbr.rel (!%p16_p5) target bundleno = 2 (0x2), region = 99 }

</bundles_post_ra>
